<compile_context>
chip_gen: v7x
topology: tpu7x:2x2x1
jax: 0.10.0
libtpu: 0.0.40
codegen_flags: <defaults>
</compile_context>

<pallas_src>
import math
from functools import partial

import jax
import jax.numpy as jnp
from jax import lax
from jax.experimental import pallas as pl
from jax.experimental.pallas import tpu as pltpu


_MASK_VALUE = -0.7 * float(jnp.finfo(jnp.float32).max)  # large finite negative (no -inf)


def _layernorm(v, scale, shift, eps=1e-5):
    mean = jnp.mean(v, axis=-1, keepdims=True)
    var = jnp.mean((v - mean) ** 2, axis=-1, keepdims=True)  # unbiased=False
    return scale * (v - mean) / jnp.sqrt(var + eps) + shift


def transformer_block_kernel(
    x_ref,                        # (Bb, T, D) f32
    ln1s_ref, ln1b_ref,           # (1, D) f32
    wqkv_ref,                     # (D, 3D) bf16  (1/sqrt(hd) folded into Q columns)
    wo_ref, bo_ref,               # (D, D) bf16, (1, D) f32
    ln2s_ref, ln2b_ref,           # (1, D) f32
    w1_ref, b1_ref,               # (D, 4D) bf16, (1, 4D) f32
    w2_ref, b2_ref,               # (4D, D) bf16, (1, D) f32
    out_ref,                      # (Bb, T, D)
    *, num_heads, bf16_transcendentals,
):
    f32 = jnp.float32
    bf16 = jnp.bfloat16

    Bb, T, D = x_ref.shape
    H = num_heads
    hd = D // H

    x = x_ref[...].astype(f32).reshape(Bb * T, D)            # flatten rows for matmuls

    # ---- norm1 + fused QKV projection: one lane-dense (D, 3D) MXU matmul ----
    h1 = _layernorm(x, ln1s_ref[0], ln1b_ref[0]).astype(bf16)
    qkv = jnp.dot(h1, wqkv_ref[...], preferred_element_type=f32)      # (Bb*T, 3D) f32

    # ---- causal attention, per head (only one (Bb,T,T) score tile live at a time) ----
    row = lax.broadcasted_iota(jnp.int32, (T, T), 0)
    col = lax.broadcasted_iota(jnp.int32, (T, T), 1)
    causal = (col <= row)[None, :, :]                                  # (1, T, T)

    ctx_heads = []
    for h in range(H):                                                 # H is small & static
        off = h * hd
        q_h = qkv[:, off:off + hd].astype(bf16).reshape(Bb, T, hd)
        k_h = qkv[:, D + off:D + off + hd].astype(bf16).reshape(Bb, T, hd)
        v_h = qkv[:, 2 * D + off:2 * D + off + hd].astype(bf16).reshape(Bb, T, hd)

        s = jnp.einsum('bqd,bkd->bqk', q_h, k_h,
                       preferred_element_type=f32)                     # (Bb, T, T) f32
        s = jnp.where(causal, s, _MASK_VALUE)
        m = jnp.max(s, axis=-1, keepdims=True)                         # f32 statistics
        if bf16_transcendentals:
            p = jnp.exp((s - m).astype(bf16))                          # EUP bf16 path (v6e/v7x)
            denom = jnp.sum(p, axis=-1, keepdims=True, dtype=f32)
        else:
            e = jnp.exp(s - m)                                         # f32 path (v5e)
            denom = jnp.sum(e, axis=-1, keepdims=True)
            p = e.astype(bf16)

        ctx = jnp.einsum('bqk,bkd->bqd', p, v_h,
                         preferred_element_type=f32)                   # (Bb, T, hd)
        ctx = ctx * pl.reciprocal(denom, approx=True)                  # row scale on EUP slot
        ctx_heads.append(ctx.reshape(Bb * T, hd).astype(bf16))

    ctx2d = jnp.concatenate(ctx_heads, axis=-1)                        # (Bb*T, D) bf16

    # ---- output projection: single (D, D) matmul, MXU accumulates across heads ----
    att = jnp.dot(ctx2d, wo_ref[...], preferred_element_type=f32) + bo_ref[0]
    x1 = x + att                                                       # residual 1 (f32)

    # ---- norm2 + feed-forward (GELU tanh approximation) ----
    h2 = _layernorm(x1, ln2s_ref[0], ln2b_ref[0]).astype(bf16)
    ff1 = jnp.dot(h2, w1_ref[...], preferred_element_type=f32) + b1_ref[0]
    c = math.sqrt(2.0 / math.pi)
    if bf16_transcendentals:
        f = ff1.astype(bf16)
        g = (0.5 * f * (1.0 + jnp.tanh(c * (f + 0.044715 * f * f * f)))).astype(bf16)
    else:
        g = (0.5 * ff1 * (1.0 + jnp.tanh(c * (ff1 + 0.044715 * ff1 * ff1 * ff1)))).astype(bf16)
    ff2 = jnp.dot(g, w2_ref[...], preferred_element_type=f32) + b2_ref[0]

    out_ref[...] = (x1 + ff2).reshape(Bb, T, D).astype(out_ref.dtype)  # residual 2


# ---------------------------------------------------------------------------
# Wrapper-side helpers
# ---------------------------------------------------------------------------

_BUFFERED_SINGLE = None


def _buffered_single_supported():
    """Feature-detect pipeline_mode=pl.Buffered(1) once with a tiny probe kernel.

    The probe is isolated so failures here never mask errors in the real kernel.
    """
    global _BUFFERED_SINGLE
    if _BUFFERED_SINGLE is not None:
        return _BUFFERED_SINGLE
    ok = False
    if hasattr(pl, "Buffered"):
        try:
            def _probe(w_ref, x_ref, o_ref):
                o_ref[...] = x_ref[...] + w_ref[...]

            probe = pl.pallas_call(
                _probe,
                out_shape=jax.ShapeDtypeStruct((16, 128), jnp.float32),
                grid=(2,),
                in_specs=[
                    pl.BlockSpec((8, 128), lambda i: (0, 0),
                                 pipeline_mode=pl.Buffered(1)),       # constant block, 1 buffer
                    pl.BlockSpec((8, 128), lambda i: (i, 0)),
                ],
                out_specs=pl.BlockSpec((8, 128), lambda i: (i, 0)),
            )
            jax.jit(probe).lower(
                jnp.zeros((8, 128), jnp.float32),
                jnp.zeros((16, 128), jnp.float32),
            ).compile()
            ok = True
        except Exception:
            ok = False
    _BUFFERED_SINGLE = ok
    return ok


def _use_bf16_transcendentals():
    """bf16 exp/tanh only where the EUP/VPU have a bf16 path (v6e / v7x)."""
    try:
        kind = jax.devices()[0].device_kind.lower()
    except Exception:
        return False
    return ("v6" in kind) or ("v7" in kind)


def _pick_batch_block(B, T):
    """Pack several batch rows per grid step so Bb*T approaches the MXU M width."""
    target_rows = 128
    attn_budget = 16 << 20  # cap per-step f32 score scratch
    best = 1
    for d in range(1, B + 1):
        if B % d:
            continue
        if 2 * d * T * T * 4 > attn_budget:
            break
        best = d
        if d * T >= target_rows:
            break
    return best


def _vmem_limit_bytes(Bb, T, D, H, single_buffer_weights):
    """Working-set-derived VMEM limit (+headroom), clamped to physical VMEM."""
    hd = D // H
    bf2, f4 = 2, 4
    wbuf = 1 if single_buffer_weights else 2
    weights = wbuf * (3 * D * D + D * D + 4 * D * D + 4 * D * D) * bf2   # Wqkv, Wo, W1, W2
    biases = wbuf * (12 * D) * f4                                        # ln scales/shifts, bo/b1/b2
    rows = Bb * T
    io = 2 * 2 * rows * D * f4                                           # x & out, double-buffered
    act = rows * 3 * D * f4 + 3 * rows * D * (bf2 + f4)                  # qkv + ln/ctx/residual temps
    attn = 2 * Bb * T * T * f4 + 3 * Bb * T * hd * bf2                   # one head's s/p + q/k/v
    ffn = 2 * rows * 4 * D * f4                                          # ff1, gelu
    est = weights + biases + io + act + attn + ffn
    try:
        cap = pltpu.get_tpu_info().vmem_capacity_bytes
    except Exception:
        cap = 64 * 1024 * 1024
    limit = int(est * 1.25) + (4 << 20)   # 25% headroom + compiler-internal scratch
    return max(16 << 20, min(limit, cap))


def transformer_block(x, params, *, num_heads):
    B, T, D = x.shape
    hd = D // num_heads
    H4 = 4 * D
    bf16 = jnp.bfloat16

    # Wrapper-side weight prep (runs once in XLA, outside the kernel):
    # fused QKV weight with the 1/sqrt(hd) scale folded into the Q columns.
    wqkv = jnp.concatenate(
        [params["wq"] * (1.0 / math.sqrt(hd)), params["wk"], params["wv"]], axis=1
    ).astype(bf16)
    wo = params["wo"].astype(bf16)
    w1 = params["w1"].astype(bf16)
    w2 = params["w2"].astype(bf16)

    Bb = _pick_batch_block(B, T)
    grid = (B // Bb,)

    single_buffer = _buffered_single_supported()
    use_bf16_trans = _use_bf16_transcendentals()

    def const_spec(shape):
        # Constant across the grid -> single-buffer (when supported) to halve
        # resident weight VMEM.
        kwargs = {}
        if single_buffer:
            kwargs["pipeline_mode"] = pl.Buffered(1)
        return pl.BlockSpec(shape, lambda b: (0,) * len(shape), **kwargs)

    in_specs = [
        pl.BlockSpec((Bb, T, D), lambda b: (b, 0, 0)),           # x (streamed per batch group)
        const_spec((1, D)), const_spec((1, D)),                  # ln1 scale/shift
        const_spec((D, 3 * D)),                                  # Wqkv
        const_spec((D, D)), const_spec((1, D)),                  # Wo, bo
        const_spec((1, D)), const_spec((1, D)),                  # ln2 scale/shift
        const_spec((D, H4)), const_spec((1, H4)),                # W1, b1
        const_spec((H4, D)), const_spec((1, D)),                 # W2, b2
    ]

    vmem_limit = _vmem_limit_bytes(Bb, T, D, num_heads, single_buffer)

    return pl.pallas_call(
        partial(transformer_block_kernel, num_heads=num_heads,
                bf16_transcendentals=use_bf16_trans),
        out_shape=jax.ShapeDtypeStruct((B, T, D), x.dtype),
        grid_spec=pltpu.PrefetchScalarGridSpec(
            num_scalar_prefetch=0,
            grid=grid,
            in_specs=in_specs,
            out_specs=pl.BlockSpec((Bb, T, D), lambda b: (b, 0, 0)),
        ),
        compiler_params=pltpu.CompilerParams(
            dimension_semantics=("parallel",),
            vmem_limit_bytes=vmem_limit,
        ),
    )(
        x,
        params["ln1_s"], params["ln1_b"],
        wqkv,
        wo, params["bo"],
        params["ln2_s"], params["ln2_b"],
        w1, params["b1"], w2, params["b2"],
    )


def transformer_block_ref(x, params, *, num_heads):
    """Pure-JAX f32 reference mirroring the PyTorch forward pass."""
    B, T, D = x.shape
    hd = D // num_heads

    def ln(v, s, b):
        mean = jnp.mean(v, axis=-1, keepdims=True)
        var = jnp.mean((v - mean) ** 2, axis=-1, keepdims=True)
        return s * (v - mean) / jnp.sqrt(var + 1e-5) + b

    h = ln(x, params["ln1_s"], params["ln1_b"])
    q = h @ params["wq"]
    k = h @ params["wk"]
    v = h @ params["wv"]
    q = q.reshape(B, T, num_heads, hd).transpose(0, 2, 1, 3)
    k = k.reshape(B, T, num_heads, hd).transpose(0, 2, 1, 3)
    v = v.reshape(B, T, num_heads, hd).transpose(0, 2, 1, 3)
    scores = jnp.einsum("bhqd,bhkd->bhqk", q, k) / math.sqrt(hd)
    mask = jnp.tril(jnp.ones((T, T), bool))
    scores = jnp.where(mask, scores, -jnp.inf)
    attn = jax.nn.softmax(scores, axis=-1)
    ctx = jnp.einsum("bhqk,bhkd->bhqd", attn, v).transpose(0, 2, 1, 3).reshape(B, T, D)
    att_out = ctx @ params["wo"] + params["bo"][0]
    x1 = x + att_out

    h2 = ln(x1, params["ln2_s"], params["ln2_b"])
    ff1 = h2 @ params["w1"] + params["b1"][0]
    c = math.sqrt(2.0 / math.pi)
    g = 0.5 * ff1 * (1.0 + jnp.tanh(c * (ff1 + 0.044715 * ff1 ** 3)))
    ff2 = g @ params["w2"] + params["b2"][0]
    return x1 + ff2


if __name__ == "__main__":
    # Small config consistent with the module: cfg = dict(emb_dim=128, context_length=8,
    # n_heads=4, drop_rate=0.0, qkv_bias=False).  emb_dim=128 keeps all stores lane-dense.
    B, T, D, H = 2, 8, 128, 4
    key = jax.random.PRNGKey(0)
    ks = jax.random.split(key, 8)
    s = 0.02
    params = {
        "ln1_s": jnp.ones((1, D), jnp.float32),
        "ln1_b": jnp.zeros((1, D), jnp.float32),
        "wq": s * jax.random.normal(ks[0], (D, D), jnp.float32),
        "wk": s * jax.random.normal(ks[1], (D, D), jnp.float32),
        "wv": s * jax.random.normal(ks[2], (D, D), jnp.float32),
        "wo": s * jax.random.normal(ks[3], (D, D), jnp.float32),
        "bo": jnp.zeros((1, D), jnp.float32),
        "ln2_s": jnp.ones((1, D), jnp.float32),
        "ln2_b": jnp.zeros((1, D), jnp.float32),
        "w1": s * jax.random.normal(ks[4], (D, 4 * D), jnp.float32),
        "b1": jnp.zeros((1, 4 * D), jnp.float32),
        "w2": s * jax.random.normal(ks[5], (4 * D, D), jnp.float32),
        "b2": jnp.zeros((1, D), jnp.float32),
    }
    x = jax.random.normal(ks[6], (B, T, D), jnp.float32)

    out = transformer_block(x, params, num_heads=H)
    jax.block_until_ready(out)

    ref = transformer_block_ref(x, params, num_heads=H)
    assert out.shape == (B, T, D)
    max_err = float(jnp.max(jnp.abs(out - ref)))
    # bf16 matmul operands + (optional) bf16 exp/tanh + approx reciprocal ->
    # relaxed (but tight for bf16) tolerance.
    assert jnp.allclose(out, ref, atol=2e-2, rtol=2e-2), \
        f"mismatch vs reference (max abs err {max_err})"
    print("KERNEL_OK")
</pallas_src>

<mosaic_0001>
module attributes {stable_mosaic.version = 11 : i64} {
  func.func @transformer_block_kernel(%arg0: i32, %arg1: memref<2x8x128xf32, #tpu.memory_space<vmem>>, %arg2: memref<1x128xf32, #tpu.memory_space<vmem>>, %arg3: memref<1x128xf32, #tpu.memory_space<vmem>>, %arg4: memref<128x384xbf16, #tpu.memory_space<vmem>>, %arg5: memref<128x128xbf16, #tpu.memory_space<vmem>>, %arg6: memref<1x128xf32, #tpu.memory_space<vmem>>, %arg7: memref<1x128xf32, #tpu.memory_space<vmem>>, %arg8: memref<1x128xf32, #tpu.memory_space<vmem>>, %arg9: memref<128x512xbf16, #tpu.memory_space<vmem>>, %arg10: memref<1x512xf32, #tpu.memory_space<vmem>>, %arg11: memref<512x128xbf16, #tpu.memory_space<vmem>>, %arg12: memref<1x128xf32, #tpu.memory_space<vmem>>, %arg13: memref<2x8x128xf32, #tpu.memory_space<vmem>>) attributes {dimension_semantics = [#tpu.dimension_semantics<parallel>], iteration_bounds = array<i64: 1>, scalar_prefetch = 0 : i64, scratch_operands = 0 : i64, tpu.core_type = #tpu.core_type<tc>, window_params = [{transform_indices = @transform_0, window_bounds = array<i64: 2, 8, 128>}, {pipeline_mode = #tpu.pipeline_mode<synchronous>, transform_indices = @transform_1, window_bounds = array<i64: 1, 128>}, {pipeline_mode = #tpu.pipeline_mode<synchronous>, transform_indices = @transform_2, window_bounds = array<i64: 1, 128>}, {pipeline_mode = #tpu.pipeline_mode<synchronous>, transform_indices = @transform_3, window_bounds = array<i64: 128, 384>}, {pipeline_mode = #tpu.pipeline_mode<synchronous>, transform_indices = @transform_4, window_bounds = array<i64: 128, 128>}, {pipeline_mode = #tpu.pipeline_mode<synchronous>, transform_indices = @transform_5, window_bounds = array<i64: 1, 128>}, {pipeline_mode = #tpu.pipeline_mode<synchronous>, transform_indices = @transform_6, window_bounds = array<i64: 1, 128>}, {pipeline_mode = #tpu.pipeline_mode<synchronous>, transform_indices = @transform_7, window_bounds = array<i64: 1, 128>}, {pipeline_mode = #tpu.pipeline_mode<synchronous>, transform_indices = @transform_8, window_bounds = array<i64: 128, 512>}, {pipeline_mode = #tpu.pipeline_mode<synchronous>, transform_indices = @transform_9, window_bounds = array<i64: 1, 512>}, {pipeline_mode = #tpu.pipeline_mode<synchronous>, transform_indices = @transform_10, window_bounds = array<i64: 512, 128>}, {pipeline_mode = #tpu.pipeline_mode<synchronous>, transform_indices = @transform_11, window_bounds = array<i64: 1, 128>}, {transform_indices = @transform_12, window_bounds = array<i64: 2, 8, 128>}]} {
    %c0 = arith.constant 0 : index
    %c0_0 = arith.constant 0 : index
    %c0_1 = arith.constant 0 : index
    %0 = vector.load %arg1[%c0, %c0_0, %c0_1] : memref<2x8x128xf32, #tpu.memory_space<vmem>>, vector<2x8x128xf32>
    %1 = vector.shape_cast %0 : vector<2x8x128xf32> to vector<16x128xf32>
    %c0_2 = arith.constant 0 : index
    %c0_3 = arith.constant 0 : index
    %2 = vector.load %arg2[%c0_2, %c0_3] : memref<1x128xf32, #tpu.memory_space<vmem>>, vector<1x128xf32>
    %3 = vector.shape_cast %2 : vector<1x128xf32> to vector<128xf32>
    %c0_4 = arith.constant 0 : index
    %c0_5 = arith.constant 0 : index
    %4 = vector.load %arg3[%c0_4, %c0_5] : memref<1x128xf32, #tpu.memory_space<vmem>>, vector<1x128xf32>
    %5 = vector.shape_cast %4 : vector<1x128xf32> to vector<128xf32>
    %cst = arith.constant dense<0.000000e+00> : vector<16xf32>
    %6 = vector.multi_reduction <add>, %1, %cst [1] : vector<16x128xf32> to vector<16xf32>
    %7 = vector.shape_cast %6 : vector<16xf32> to vector<16x1xf32>
    %cst_6 = arith.constant 1.280000e+02 : f32
    %8 = vector.broadcast %cst_6 : f32 to vector<16x1xf32>
    %9 = arith.divf %7, %8 : vector<16x1xf32>
    %10 = vector.broadcast %9 : vector<16x1xf32> to vector<16x128xf32>
    %11 = arith.subf %1, %10 : vector<16x128xf32>
    %12 = arith.mulf %11, %11 : vector<16x128xf32>
    %cst_7 = arith.constant dense<0.000000e+00> : vector<16xf32>
    %13 = vector.multi_reduction <add>, %12, %cst_7 [1] : vector<16x128xf32> to vector<16xf32>
    %14 = vector.shape_cast %13 : vector<16xf32> to vector<16x1xf32>
    %cst_8 = arith.constant 1.280000e+02 : f32
    %15 = vector.broadcast %cst_8 : f32 to vector<16x1xf32>
    %16 = arith.divf %14, %15 : vector<16x1xf32>
    %17 = vector.broadcast %9 : vector<16x1xf32> to vector<16x128xf32>
    %18 = arith.subf %1, %17 : vector<16x128xf32>
    %19 = vector.shape_cast %3 : vector<128xf32> to vector<1x128xf32>
    %20 = vector.broadcast %19 : vector<1x128xf32> to vector<16x128xf32>
    %21 = arith.mulf %20, %18 : vector<16x128xf32>
    %cst_9 = arith.constant 9.99999974E-6 : f32
    %22 = vector.broadcast %cst_9 : f32 to vector<16x1xf32>
    %23 = arith.addf %16, %22 : vector<16x1xf32>
    %24 = math.sqrt %23 : vector<16x1xf32>
    %25 = vector.broadcast %24 : vector<16x1xf32> to vector<16x128xf32>
    %26 = arith.divf %21, %25 : vector<16x128xf32>
    %27 = vector.shape_cast %5 : vector<128xf32> to vector<1x128xf32>
    %28 = vector.broadcast %27 : vector<1x128xf32> to vector<16x128xf32>
    %29 = arith.addf %26, %28 : vector<16x128xf32>
    %30 = arith.truncf %29 : vector<16x128xf32> to vector<16x128xbf16>
    %c0_10 = arith.constant 0 : index
    %c0_11 = arith.constant 0 : index
    %31 = vector.load %arg4[%c0_10, %c0_11] : memref<128x384xbf16, #tpu.memory_space<vmem>>, vector<128x384xbf16>
    %cst_12 = arith.constant dense<0.000000e+00> : vector<16x384xf32>
    %32 = tpu.matmul %30, %31, %cst_12 {dimension_numbers = #tpu.dot_dimension_numbers<[1], [0], [0], [1], [0, 0, 1, 1], [], []>} : vector<16x128xbf16>, vector<128x384xbf16>, vector<16x384xf32> -> vector<16x384xf32>
    %33 = tpu.iota {dimensions = array<i32: 0>} : vector<8x8xi32>
    %34 = tpu.iota {dimensions = array<i32: 1>} : vector<8x8xi32>
    %35 = arith.cmpi sle, %34, %33 : vector<8x8xi32>
    %36 = vector.shape_cast %35 : vector<8x8xi1> to vector<1x8x8xi1>
    %37 = vector.extract_strided_slice %32 {offsets = [0, 0], sizes = [16, 32], strides = [1, 1]} : vector<16x384xf32> to vector<16x32xf32>
    %38 = arith.truncf %37 : vector<16x32xf32> to vector<16x32xbf16>
    %39 = vector.shape_cast %38 : vector<16x32xbf16> to vector<2x8x32xbf16>
    %40 = vector.extract_strided_slice %32 {offsets = [0, 128], sizes = [16, 32], strides = [1, 1]} : vector<16x384xf32> to vector<16x32xf32>
    %41 = arith.truncf %40 : vector<16x32xf32> to vector<16x32xbf16>
    %42 = vector.shape_cast %41 : vector<16x32xbf16> to vector<2x8x32xbf16>
    %43 = vector.extract_strided_slice %32 {offsets = [0, 256], sizes = [16, 32], strides = [1, 1]} : vector<16x384xf32> to vector<16x32xf32>
    %44 = arith.truncf %43 : vector<16x32xf32> to vector<16x32xbf16>
    %45 = vector.shape_cast %44 : vector<16x32xbf16> to vector<2x8x32xbf16>
    "tpu.trace_start"() <{level = 10 : i32, message = "bqd,bkd->bqk"}> : () -> ()
    %cst_13 = arith.constant dense<0.000000e+00> : vector<2x8x8xf32>
    %46 = tpu.matmul %39, %42, %cst_13 {dimension_numbers = #tpu.dot_dimension_numbers<[2], [2], [1], [1], [0, 0, 0, 1, 1, 1], [0], [0]>} : vector<2x8x32xbf16>, vector<2x8x32xbf16>, vector<2x8x8xf32> -> vector<2x8x8xf32>
    %cst_14 = arith.constant -2.38197633E+38 : f32
    "tpu.trace_stop"() : () -> ()
    %47 = vector.shape_cast %36 : vector<1x8x8xi1> to vector<1x8x8xi1>
    %48 = vector.broadcast %47 : vector<1x8x8xi1> to vector<2x8x8xi1>
    %49 = vector.broadcast %cst_14 : f32 to vector<2x8x8xf32>
    %50 = arith.select %48, %46, %49 : vector<2x8x8xi1>, vector<2x8x8xf32>
    %cst_15 = arith.constant dense<0xFF800000> : vector<2x8xf32>
    %51 = vector.multi_reduction <maximumf>, %50, %cst_15 [2] : vector<2x8x8xf32> to vector<2x8xf32>
    %52 = vector.shape_cast %51 : vector<2x8xf32> to vector<2x8x1xf32>
    %53 = vector.broadcast %52 : vector<2x8x1xf32> to vector<2x8x8xf32>
    %54 = arith.subf %50, %53 : vector<2x8x8xf32>
    %55 = math.exp %54 : vector<2x8x8xf32>
    %cst_16 = arith.constant dense<0.000000e+00> : vector<2x8xf32>
    %56 = vector.multi_reduction <add>, %55, %cst_16 [2] : vector<2x8x8xf32> to vector<2x8xf32>
    %57 = vector.shape_cast %56 : vector<2x8xf32> to vector<2x8x1xf32>
    %58 = arith.truncf %55 : vector<2x8x8xf32> to vector<2x8x8xbf16>
    "tpu.trace_start"() <{level = 10 : i32, message = "bqk,bkd->bqd"}> : () -> ()
    %cst_17 = arith.constant dense<0.000000e+00> : vector<2x8x32xf32>
    %59 = tpu.matmul %58, %45, %cst_17 {dimension_numbers = #tpu.dot_dimension_numbers<[2], [1], [1], [2], [0, 0, 0, 1, 1, 2], [0], [0]>} : vector<2x8x8xbf16>, vector<2x8x32xbf16>, vector<2x8x32xf32> -> vector<2x8x32xf32>
    "tpu.trace_stop"() : () -> ()
    %60 = tpu.reciprocal %57 {approx = true} : vector<2x8x1xf32> -> vector<2x8x1xf32>
    %61 = vector.broadcast %60 : vector<2x8x1xf32> to vector<2x8x32xf32>
    %62 = arith.mulf %59, %61 : vector<2x8x32xf32>
    %63 = vector.shape_cast %62 : vector<2x8x32xf32> to vector<16x32xf32>
    %64 = arith.truncf %63 : vector<16x32xf32> to vector<16x32xbf16>
    %65 = vector.extract_strided_slice %32 {offsets = [0, 32], sizes = [16, 32], strides = [1, 1]} : vector<16x384xf32> to vector<16x32xf32>
    %66 = arith.truncf %65 : vector<16x32xf32> to vector<16x32xbf16>
    %67 = vector.shape_cast %66 : vector<16x32xbf16> to vector<2x8x32xbf16>
    %68 = vector.extract_strided_slice %32 {offsets = [0, 160], sizes = [16, 32], strides = [1, 1]} : vector<16x384xf32> to vector<16x32xf32>
    %69 = arith.truncf %68 : vector<16x32xf32> to vector<16x32xbf16>
    %70 = vector.shape_cast %69 : vector<16x32xbf16> to vector<2x8x32xbf16>
    %71 = vector.extract_strided_slice %32 {offsets = [0, 288], sizes = [16, 32], strides = [1, 1]} : vector<16x384xf32> to vector<16x32xf32>
    %72 = arith.truncf %71 : vector<16x32xf32> to vector<16x32xbf16>
    %73 = vector.shape_cast %72 : vector<16x32xbf16> to vector<2x8x32xbf16>
    "tpu.trace_start"() <{level = 10 : i32, message = "bqd,bkd->bqk"}> : () -> ()
    %cst_18 = arith.constant dense<0.000000e+00> : vector<2x8x8xf32>
    %74 = tpu.matmul %67, %70, %cst_18 {dimension_numbers = #tpu.dot_dimension_numbers<[2], [2], [1], [1], [0, 0, 0, 1, 1, 1], [0], [0]>} : vector<2x8x32xbf16>, vector<2x8x32xbf16>, vector<2x8x8xf32> -> vector<2x8x8xf32>
    %cst_19 = arith.constant -2.38197633E+38 : f32
    "tpu.trace_stop"() : () -> ()
    %75 = vector.shape_cast %36 : vector<1x8x8xi1> to vector<1x8x8xi1>
    %76 = vector.broadcast %75 : vector<1x8x8xi1> to vector<2x8x8xi1>
    %77 = vector.broadcast %cst_19 : f32 to vector<2x8x8xf32>
    %78 = arith.select %76, %74, %77 : vector<2x8x8xi1>, vector<2x8x8xf32>
    %cst_20 = arith.constant dense<0xFF800000> : vector<2x8xf32>
    %79 = vector.multi_reduction <maximumf>, %78, %cst_20 [2] : vector<2x8x8xf32> to vector<2x8xf32>
    %80 = vector.shape_cast %79 : vector<2x8xf32> to vector<2x8x1xf32>
    %81 = vector.broadcast %80 : vector<2x8x1xf32> to vector<2x8x8xf32>
    %82 = arith.subf %78, %81 : vector<2x8x8xf32>
    %83 = math.exp %82 : vector<2x8x8xf32>
    %cst_21 = arith.constant dense<0.000000e+00> : vector<2x8xf32>
    %84 = vector.multi_reduction <add>, %83, %cst_21 [2] : vector<2x8x8xf32> to vector<2x8xf32>
    %85 = vector.shape_cast %84 : vector<2x8xf32> to vector<2x8x1xf32>
    %86 = arith.truncf %83 : vector<2x8x8xf32> to vector<2x8x8xbf16>
    "tpu.trace_start"() <{level = 10 : i32, message = "bqk,bkd->bqd"}> : () -> ()
    %cst_22 = arith.constant dense<0.000000e+00> : vector<2x8x32xf32>
    %87 = tpu.matmul %86, %73, %cst_22 {dimension_numbers = #tpu.dot_dimension_numbers<[2], [1], [1], [2], [0, 0, 0, 1, 1, 2], [0], [0]>} : vector<2x8x8xbf16>, vector<2x8x32xbf16>, vector<2x8x32xf32> -> vector<2x8x32xf32>
    "tpu.trace_stop"() : () -> ()
    %88 = tpu.reciprocal %85 {approx = true} : vector<2x8x1xf32> -> vector<2x8x1xf32>
    %89 = vector.broadcast %88 : vector<2x8x1xf32> to vector<2x8x32xf32>
    %90 = arith.mulf %87, %89 : vector<2x8x32xf32>
    %91 = vector.shape_cast %90 : vector<2x8x32xf32> to vector<16x32xf32>
    %92 = arith.truncf %91 : vector<16x32xf32> to vector<16x32xbf16>
    %93 = vector.extract_strided_slice %32 {offsets = [0, 64], sizes = [16, 32], strides = [1, 1]} : vector<16x384xf32> to vector<16x32xf32>
    %94 = arith.truncf %93 : vector<16x32xf32> to vector<16x32xbf16>
    %95 = vector.shape_cast %94 : vector<16x32xbf16> to vector<2x8x32xbf16>
    %96 = vector.extract_strided_slice %32 {offsets = [0, 192], sizes = [16, 32], strides = [1, 1]} : vector<16x384xf32> to vector<16x32xf32>
    %97 = arith.truncf %96 : vector<16x32xf32> to vector<16x32xbf16>
    %98 = vector.shape_cast %97 : vector<16x32xbf16> to vector<2x8x32xbf16>
    %99 = vector.extract_strided_slice %32 {offsets = [0, 320], sizes = [16, 32], strides = [1, 1]} : vector<16x384xf32> to vector<16x32xf32>
    %100 = arith.truncf %99 : vector<16x32xf32> to vector<16x32xbf16>
    %101 = vector.shape_cast %100 : vector<16x32xbf16> to vector<2x8x32xbf16>
    "tpu.trace_start"() <{level = 10 : i32, message = "bqd,bkd->bqk"}> : () -> ()
    %cst_23 = arith.constant dense<0.000000e+00> : vector<2x8x8xf32>
    %102 = tpu.matmul %95, %98, %cst_23 {dimension_numbers = #tpu.dot_dimension_numbers<[2], [2], [1], [1], [0, 0, 0, 1, 1, 1], [0], [0]>} : vector<2x8x32xbf16>, vector<2x8x32xbf16>, vector<2x8x8xf32> -> vector<2x8x8xf32>
    %cst_24 = arith.constant -2.38197633E+38 : f32
    "tpu.trace_stop"() : () -> ()
    %103 = vector.shape_cast %36 : vector<1x8x8xi1> to vector<1x8x8xi1>
    %104 = vector.broadcast %103 : vector<1x8x8xi1> to vector<2x8x8xi1>
    %105 = vector.broadcast %cst_24 : f32 to vector<2x8x8xf32>
    %106 = arith.select %104, %102, %105 : vector<2x8x8xi1>, vector<2x8x8xf32>
    %cst_25 = arith.constant dense<0xFF800000> : vector<2x8xf32>
    %107 = vector.multi_reduction <maximumf>, %106, %cst_25 [2] : vector<2x8x8xf32> to vector<2x8xf32>
    %108 = vector.shape_cast %107 : vector<2x8xf32> to vector<2x8x1xf32>
    %109 = vector.broadcast %108 : vector<2x8x1xf32> to vector<2x8x8xf32>
    %110 = arith.subf %106, %109 : vector<2x8x8xf32>
    %111 = math.exp %110 : vector<2x8x8xf32>
    %cst_26 = arith.constant dense<0.000000e+00> : vector<2x8xf32>
    %112 = vector.multi_reduction <add>, %111, %cst_26 [2] : vector<2x8x8xf32> to vector<2x8xf32>
    %113 = vector.shape_cast %112 : vector<2x8xf32> to vector<2x8x1xf32>
    %114 = arith.truncf %111 : vector<2x8x8xf32> to vector<2x8x8xbf16>
    "tpu.trace_start"() <{level = 10 : i32, message = "bqk,bkd->bqd"}> : () -> ()
    %cst_27 = arith.constant dense<0.000000e+00> : vector<2x8x32xf32>
    %115 = tpu.matmul %114, %101, %cst_27 {dimension_numbers = #tpu.dot_dimension_numbers<[2], [1], [1], [2], [0, 0, 0, 1, 1, 2], [0], [0]>} : vector<2x8x8xbf16>, vector<2x8x32xbf16>, vector<2x8x32xf32> -> vector<2x8x32xf32>
    "tpu.trace_stop"() : () -> ()
    %116 = tpu.reciprocal %113 {approx = true} : vector<2x8x1xf32> -> vector<2x8x1xf32>
    %117 = vector.broadcast %116 : vector<2x8x1xf32> to vector<2x8x32xf32>
    %118 = arith.mulf %115, %117 : vector<2x8x32xf32>
    %119 = vector.shape_cast %118 : vector<2x8x32xf32> to vector<16x32xf32>
    %120 = arith.truncf %119 : vector<16x32xf32> to vector<16x32xbf16>
    %121 = vector.extract_strided_slice %32 {offsets = [0, 96], sizes = [16, 32], strides = [1, 1]} : vector<16x384xf32> to vector<16x32xf32>
    %122 = arith.truncf %121 : vector<16x32xf32> to vector<16x32xbf16>
    %123 = vector.shape_cast %122 : vector<16x32xbf16> to vector<2x8x32xbf16>
    %124 = vector.extract_strided_slice %32 {offsets = [0, 224], sizes = [16, 32], strides = [1, 1]} : vector<16x384xf32> to vector<16x32xf32>
    %125 = arith.truncf %124 : vector<16x32xf32> to vector<16x32xbf16>
    %126 = vector.shape_cast %125 : vector<16x32xbf16> to vector<2x8x32xbf16>
    %127 = vector.extract_strided_slice %32 {offsets = [0, 352], sizes = [16, 32], strides = [1, 1]} : vector<16x384xf32> to vector<16x32xf32>
    %128 = arith.truncf %127 : vector<16x32xf32> to vector<16x32xbf16>
    %129 = vector.shape_cast %128 : vector<16x32xbf16> to vector<2x8x32xbf16>
    "tpu.trace_start"() <{level = 10 : i32, message = "bqd,bkd->bqk"}> : () -> ()
    %cst_28 = arith.constant dense<0.000000e+00> : vector<2x8x8xf32>
    %130 = tpu.matmul %123, %126, %cst_28 {dimension_numbers = #tpu.dot_dimension_numbers<[2], [2], [1], [1], [0, 0, 0, 1, 1, 1], [0], [0]>} : vector<2x8x32xbf16>, vector<2x8x32xbf16>, vector<2x8x8xf32> -> vector<2x8x8xf32>
    %cst_29 = arith.constant -2.38197633E+38 : f32
    "tpu.trace_stop"() : () -> ()
    %131 = vector.shape_cast %36 : vector<1x8x8xi1> to vector<1x8x8xi1>
    %132 = vector.broadcast %131 : vector<1x8x8xi1> to vector<2x8x8xi1>
    %133 = vector.broadcast %cst_29 : f32 to vector<2x8x8xf32>
    %134 = arith.select %132, %130, %133 : vector<2x8x8xi1>, vector<2x8x8xf32>
    %cst_30 = arith.constant dense<0xFF800000> : vector<2x8xf32>
    %135 = vector.multi_reduction <maximumf>, %134, %cst_30 [2] : vector<2x8x8xf32> to vector<2x8xf32>
    %136 = vector.shape_cast %135 : vector<2x8xf32> to vector<2x8x1xf32>
    %137 = vector.broadcast %136 : vector<2x8x1xf32> to vector<2x8x8xf32>
    %138 = arith.subf %134, %137 : vector<2x8x8xf32>
    %139 = math.exp %138 : vector<2x8x8xf32>
    %cst_31 = arith.constant dense<0.000000e+00> : vector<2x8xf32>
    %140 = vector.multi_reduction <add>, %139, %cst_31 [2] : vector<2x8x8xf32> to vector<2x8xf32>
    %141 = vector.shape_cast %140 : vector<2x8xf32> to vector<2x8x1xf32>
    %142 = arith.truncf %139 : vector<2x8x8xf32> to vector<2x8x8xbf16>
    "tpu.trace_start"() <{level = 10 : i32, message = "bqk,bkd->bqd"}> : () -> ()
    %cst_32 = arith.constant dense<0.000000e+00> : vector<2x8x32xf32>
    %143 = tpu.matmul %142, %129, %cst_32 {dimension_numbers = #tpu.dot_dimension_numbers<[2], [1], [1], [2], [0, 0, 0, 1, 1, 2], [0], [0]>} : vector<2x8x8xbf16>, vector<2x8x32xbf16>, vector<2x8x32xf32> -> vector<2x8x32xf32>
    "tpu.trace_stop"() : () -> ()
    %144 = tpu.reciprocal %141 {approx = true} : vector<2x8x1xf32> -> vector<2x8x1xf32>
    %145 = vector.broadcast %144 : vector<2x8x1xf32> to vector<2x8x32xf32>
    %146 = arith.mulf %143, %145 : vector<2x8x32xf32>
    %147 = vector.shape_cast %146 : vector<2x8x32xf32> to vector<16x32xf32>
    %148 = arith.truncf %147 : vector<16x32xf32> to vector<16x32xbf16>
    %149 = tpu.concatenate %64, %92, %120, %148 in 1 : vector<16x32xbf16>, vector<16x32xbf16>, vector<16x32xbf16>, vector<16x32xbf16> -> vector<16x128xbf16>
    %c0_33 = arith.constant 0 : index
    %c0_34 = arith.constant 0 : index
    %150 = vector.load %arg5[%c0_33, %c0_34] : memref<128x128xbf16, #tpu.memory_space<vmem>>, vector<128x128xbf16>
    %cst_35 = arith.constant dense<0.000000e+00> : vector<16x128xf32>
    %151 = tpu.matmul %149, %150, %cst_35 {dimension_numbers = #tpu.dot_dimension_numbers<[1], [0], [0], [1], [0, 0, 1, 1], [], []>} : vector<16x128xbf16>, vector<128x128xbf16>, vector<16x128xf32> -> vector<16x128xf32>
    %c0_36 = arith.constant 0 : index
    %c0_37 = arith.constant 0 : index
    %152 = vector.load %arg6[%c0_36, %c0_37] : memref<1x128xf32, #tpu.memory_space<vmem>>, vector<1x128xf32>
    %153 = vector.shape_cast %152 : vector<1x128xf32> to vector<128xf32>
    %154 = vector.shape_cast %153 : vector<128xf32> to vector<1x128xf32>
    %155 = vector.broadcast %154 : vector<1x128xf32> to vector<16x128xf32>
    %156 = arith.addf %151, %155 : vector<16x128xf32>
    %157 = arith.addf %1, %156 : vector<16x128xf32>
    %c0_38 = arith.constant 0 : index
    %c0_39 = arith.constant 0 : index
    %158 = vector.load %arg7[%c0_38, %c0_39] : memref<1x128xf32, #tpu.memory_space<vmem>>, vector<1x128xf32>
    %159 = vector.shape_cast %158 : vector<1x128xf32> to vector<128xf32>
    %c0_40 = arith.constant 0 : index
    %c0_41 = arith.constant 0 : index
    %160 = vector.load %arg8[%c0_40, %c0_41] : memref<1x128xf32, #tpu.memory_space<vmem>>, vector<1x128xf32>
    %161 = vector.shape_cast %160 : vector<1x128xf32> to vector<128xf32>
    %cst_42 = arith.constant dense<0.000000e+00> : vector<16xf32>
    %162 = vector.multi_reduction <add>, %157, %cst_42 [1] : vector<16x128xf32> to vector<16xf32>
    %163 = vector.shape_cast %162 : vector<16xf32> to vector<16x1xf32>
    %cst_43 = arith.constant 1.280000e+02 : f32
    %164 = vector.broadcast %cst_43 : f32 to vector<16x1xf32>
    %165 = arith.divf %163, %164 : vector<16x1xf32>
    %166 = vector.broadcast %165 : vector<16x1xf32> to vector<16x128xf32>
    %167 = arith.subf %157, %166 : vector<16x128xf32>
    %168 = arith.mulf %167, %167 : vector<16x128xf32>
    %cst_44 = arith.constant dense<0.000000e+00> : vector<16xf32>
    %169 = vector.multi_reduction <add>, %168, %cst_44 [1] : vector<16x128xf32> to vector<16xf32>
    %170 = vector.shape_cast %169 : vector<16xf32> to vector<16x1xf32>
    %cst_45 = arith.constant 1.280000e+02 : f32
    %171 = vector.broadcast %cst_45 : f32 to vector<16x1xf32>
    %172 = arith.divf %170, %171 : vector<16x1xf32>
    %173 = vector.broadcast %165 : vector<16x1xf32> to vector<16x128xf32>
    %174 = arith.subf %157, %173 : vector<16x128xf32>
    %175 = vector.shape_cast %159 : vector<128xf32> to vector<1x128xf32>
    %176 = vector.broadcast %175 : vector<1x128xf32> to vector<16x128xf32>
    %177 = arith.mulf %176, %174 : vector<16x128xf32>
    %cst_46 = arith.constant 9.99999974E-6 : f32
    %178 = vector.broadcast %cst_46 : f32 to vector<16x1xf32>
    %179 = arith.addf %172, %178 : vector<16x1xf32>
    %180 = math.sqrt %179 : vector<16x1xf32>
    %181 = vector.broadcast %180 : vector<16x1xf32> to vector<16x128xf32>
    %182 = arith.divf %177, %181 : vector<16x128xf32>
    %183 = vector.shape_cast %161 : vector<128xf32> to vector<1x128xf32>
    %184 = vector.broadcast %183 : vector<1x128xf32> to vector<16x128xf32>
    %185 = arith.addf %182, %184 : vector<16x128xf32>
    %186 = arith.truncf %185 : vector<16x128xf32> to vector<16x128xbf16>
    %c0_47 = arith.constant 0 : index
    %c0_48 = arith.constant 0 : index
    %187 = vector.load %arg9[%c0_47, %c0_48] : memref<128x512xbf16, #tpu.memory_space<vmem>>, vector<128x512xbf16>
    %cst_49 = arith.constant dense<0.000000e+00> : vector<16x512xf32>
    %188 = tpu.matmul %186, %187, %cst_49 {dimension_numbers = #tpu.dot_dimension_numbers<[1], [0], [0], [1], [0, 0, 1, 1], [], []>} : vector<16x128xbf16>, vector<128x512xbf16>, vector<16x512xf32> -> vector<16x512xf32>
    %c0_50 = arith.constant 0 : index
    %c0_51 = arith.constant 0 : index
    %189 = vector.load %arg10[%c0_50, %c0_51] : memref<1x512xf32, #tpu.memory_space<vmem>>, vector<1x512xf32>
    %190 = vector.shape_cast %189 : vector<1x512xf32> to vector<512xf32>
    %191 = vector.shape_cast %190 : vector<512xf32> to vector<1x512xf32>
    %192 = vector.broadcast %191 : vector<1x512xf32> to vector<16x512xf32>
    %193 = arith.addf %188, %192 : vector<16x512xf32>
    %cst_52 = arith.constant 5.000000e-01 : f32
    %194 = vector.broadcast %cst_52 : f32 to vector<16x512xf32>
    %195 = arith.mulf %194, %193 : vector<16x512xf32>
    %cst_53 = arith.constant 4.471500e-02 : f32
    %196 = vector.broadcast %cst_53 : f32 to vector<16x512xf32>
    %197 = arith.mulf %196, %193 : vector<16x512xf32>
    %198 = arith.mulf %197, %193 : vector<16x512xf32>
    %199 = arith.mulf %198, %193 : vector<16x512xf32>
    %200 = arith.addf %193, %199 : vector<16x512xf32>
    %cst_54 = arith.constant 0.797884583 : f32
    %201 = vector.broadcast %cst_54 : f32 to vector<16x512xf32>
    %202 = arith.mulf %201, %200 : vector<16x512xf32>
    %203 = math.tanh %202 : vector<16x512xf32>
    %cst_55 = arith.constant 1.000000e+00 : f32
    %204 = vector.broadcast %cst_55 : f32 to vector<16x512xf32>
    %205 = arith.addf %204, %203 : vector<16x512xf32>
    %206 = arith.mulf %195, %205 : vector<16x512xf32>
    %207 = arith.truncf %206 : vector<16x512xf32> to vector<16x512xbf16>
    %c0_56 = arith.constant 0 : index
    %c0_57 = arith.constant 0 : index
    %208 = vector.load %arg11[%c0_56, %c0_57] : memref<512x128xbf16, #tpu.memory_space<vmem>>, vector<512x128xbf16>
    %cst_58 = arith.constant dense<0.000000e+00> : vector<16x128xf32>
    %209 = tpu.matmul %207, %208, %cst_58 {dimension_numbers = #tpu.dot_dimension_numbers<[1], [0], [0], [1], [0, 0, 1, 1], [], []>} : vector<16x512xbf16>, vector<512x128xbf16>, vector<16x128xf32> -> vector<16x128xf32>
    %c0_59 = arith.constant 0 : index
    %c0_60 = arith.constant 0 : index
    %210 = vector.load %arg12[%c0_59, %c0_60] : memref<1x128xf32, #tpu.memory_space<vmem>>, vector<1x128xf32>
    %211 = vector.shape_cast %210 : vector<1x128xf32> to vector<128xf32>
    %212 = vector.shape_cast %211 : vector<128xf32> to vector<1x128xf32>
    %213 = vector.broadcast %212 : vector<1x128xf32> to vector<16x128xf32>
    %214 = arith.addf %209, %213 : vector<16x128xf32>
    %215 = arith.addf %157, %214 : vector<16x128xf32>
    %216 = vector.shape_cast %215 : vector<16x128xf32> to vector<2x8x128xf32>
    %c0_61 = arith.constant 0 : index
    %c0_62 = arith.constant 0 : index
    %c0_63 = arith.constant 0 : index
    %217 = vector.load %arg13[%c0_61, %c0_62, %c0_63] : memref<2x8x128xf32, #tpu.memory_space<vmem>>, vector<2x8x128xf32>
    tpu.vector_store %arg13[%c0_61, %c0_62, %c0_63], %216 {strides = array<i32>} : memref<2x8x128xf32, #tpu.memory_space<vmem>>, vector<2x8x128xf32>,
    return
  }
  func.func @transform_0(%arg0: i32) -> (i32, i32, i32) {
    %c0_i32 = arith.constant 0 : i32
    %c0_i32_0 = arith.constant 0 : i32
    %c0_i32_1 = arith.constant 0 : i32
    return %arg0, %c0_i32, %c0_i32_0 : i32, i32, i32
  }
  func.func @transform_1(%arg0: i32) -> (i32, i32) {
    %c0_i32 = arith.constant 0 : i32
    %c0_i32_0 = arith.constant 0 : i32
    %c0_i32_1 = arith.constant 0 : i32
    return %c0_i32, %c0_i32_0 : i32, i32
  }
  func.func @transform_2(%arg0: i32) -> (i32, i32) {
    %c0_i32 = arith.constant 0 : i32
    %c0_i32_0 = arith.constant 0 : i32
    %c0_i32_1 = arith.constant 0 : i32
    return %c0_i32, %c0_i32_0 : i32, i32
  }
  func.func @transform_3(%arg0: i32) -> (i32, i32) {
    %c0_i32 = arith.constant 0 : i32
    %c0_i32_0 = arith.constant 0 : i32
    %c0_i32_1 = arith.constant 0 : i32
    return %c0_i32, %c0_i32_0 : i32, i32
  }
  func.func @transform_4(%arg0: i32) -> (i32, i32) {
    %c0_i32 = arith.constant 0 : i32
    %c0_i32_0 = arith.constant 0 : i32
    %c0_i32_1 = arith.constant 0 : i32
    return %c0_i32, %c0_i32_0 : i32, i32
  }
  func.func @transform_5(%arg0: i32) -> (i32, i32) {
    %c0_i32 = arith.constant 0 : i32
    %c0_i32_0 = arith.constant 0 : i32
    %c0_i32_1 = arith.constant 0 : i32
    return %c0_i32, %c0_i32_0 : i32, i32
  }
  func.func @transform_6(%arg0: i32) -> (i32, i32) {
    %c0_i32 = arith.constant 0 : i32
    %c0_i32_0 = arith.constant 0 : i32
    %c0_i32_1 = arith.constant 0 : i32
    return %c0_i32, %c0_i32_0 : i32, i32
  }
  func.func @transform_7(%arg0: i32) -> (i32, i32) {
    %c0_i32 = arith.constant 0 : i32
    %c0_i32_0 = arith.constant 0 : i32
    %c0_i32_1 = arith.constant 0 : i32
    return %c0_i32, %c0_i32_0 : i32, i32
  }
  func.func @transform_8(%arg0: i32) -> (i32, i32) {
    %c0_i32 = arith.constant 0 : i32
    %c0_i32_0 = arith.constant 0 : i32
    %c0_i32_1 = arith.constant 0 : i32
    return %c0_i32, %c0_i32_0 : i32, i32
  }
  func.func @transform_9(%arg0: i32) -> (i32, i32) {
    %c0_i32 = arith.constant 0 : i32
    %c0_i32_0 = arith.constant 0 : i32
    %c0_i32_1 = arith.constant 0 : i32
    return %c0_i32, %c0_i32_0 : i32, i32
  }
  func.func @transform_10(%arg0: i32) -> (i32, i32) {
    %c0_i32 = arith.constant 0 : i32
    %c0_i32_0 = arith.constant 0 : i32
    %c0_i32_1 = arith.constant 0 : i32
    return %c0_i32, %c0_i32_0 : i32, i32
  }
  func.func @transform_11(%arg0: i32) -> (i32, i32) {
    %c0_i32 = arith.constant 0 : i32
    %c0_i32_0 = arith.constant 0 : i32
    %c0_i32_1 = arith.constant 0 : i32
    return %c0_i32, %c0_i32_0 : i32, i32
  }
  func.func @transform_12(%arg0: i32) -> (i32, i32, i32) {
    %c0_i32 = arith.constant 0 : i32
    %c0_i32_0 = arith.constant 0 : i32
    %c0_i32_1 = arith.constant 0 : i32
    return %arg0, %c0_i32, %c0_i32_0 : i32, i32, i32
  }
}

</mosaic_0001>

<bundles_post_ra>
// kernel: tpu_custom_call.1
= control target key start
LH: loop header
LB: loop body
LE: loop exit
PB: predicated region body
PF: predicated region fallthrough
CT: control target
= control target key end

     0   :  { %17 = vsyncpa [#allocation3], 0  ;;  %s3456_s0 = inlined_call_operand.hbm [shape: f32[2,8,128], index: 0, kind: input, shape index: {}]   ;;  %s3457_s1 = inlined_call_operand.vmem [shape: f32[1,128], index: 1, kind: input, shape index: {}]   ;;  %s3458_s2 = inlined_call_operand.vmem [shape: f32[1,128], index: 2, kind: input, shape index: {}]   ;;  %s3459_s3 = inlined_call_operand.hbm [shape: bf16[128,384], index: 3, kind: input, shape index: {}]   ;;  %s3460_s4 = inlined_call_operand.hbm [shape: bf16[128,128], index: 4, kind: input, shape index: {}]   ;;  %s3461_s5 = inlined_call_operand.vmem [shape: f32[1,128], index: 5, kind: input, shape index: {}]   ;;  %s3462_s6 = inlined_call_operand.vmem [shape: f32[1,128], index: 6, kind: input, shape index: {}]   ;;  %s3463_s7 = inlined_call_operand.vmem [shape: f32[1,128], index: 7, kind: input, shape index: {}]   ;;  %s3464_s8 = inlined_call_operand.hbm [shape: bf16[128,512], index: 8, kind: input, shape index: {}]   ;;  %s3465_s9 = inlined_call_operand.vmem [shape: f32[1,512], index: 9, kind: input, shape index: {}]   ;;  %s3466_s10 = inlined_call_operand.hbm [shape: bf16[512,128], index: 10, kind: input, shape index: {}]   ;;  %s3467_s11 = inlined_call_operand.vmem [shape: f32[1,128], index: 11, kind: input, shape index: {}]   ;;  %s3468_s12 = inlined_call_operand.hbm [shape: f32[2,8,128], index: 12, kind: output, shape index: {}]  }
   0x1   :  { %18 = vsyncpa [#allocation6], 0 }
   0x2   :  { %19 = vsyncpa [#allocation9], 0 }
   0x3   :  { %20 = vsyncpa [#allocation4], 0  ;;  %s2958_s21 = smov [#allocation5]   ;;  %s2818_s25 = scalar_lea.hbm %s3459_s3, 3072 }
   0x4   :  { %s42_s22 = sshll.u32 %s2958_s21, 4  ;;  %p2819_p0 = scmp.ne.s32.totalorder %s3459_s3, %s2818_s25  ;;  %s43_s22 = int_to_ptr.vmem [resolvable:$true] %s42_s22 }
   0x5   :  { %p2822_p1 = scmp.lt.u32.totalorder %s2818_s25, %s3459_s3 }
   0x7   :  { %p2824_p2 = pnand %p2822_p1, %p2819_p0 }
   0x9   :  { %2827 = shalt.err (!%p2824_p2)
}
   0xa   :  { %s2828_s30 = scalar_lea.vmem %s43_s22, 3072  ;;  %p2833_p4 = scmp.lt.s32.totalorder %s43_s22, %s43_s22 }
   0xb   :  { %p2829_p3 = scmp.ne.s32.totalorder %s43_s22, %s2828_s30  ;;  %p2834_p5 = scmp.lt.s32.totalorder %s2828_s30, %s2828_s30 }
   0xd   :  { %p2835_p6 = por %p2834_p5, %p2833_p4 }
   0xf   :  { %p2836_p7 = pnand %p2835_p6, %p2829_p3 }
  0x11   :  { %2839 = shalt.err (!%p2836_p7)
}
  0x12   :  { %s2959_s13 = smov 192   ;;  %s2960_s14 = smov 12  }
  0x13   :  { %48 = dma.hbm_to_vmem [thread:$0]  %s3459_s3, 3072, %s43_s22, [#allocation6], %s2959_s13, %s2959_s13, %s2960_s14  }
  0x14   :  { %s2961_s17 = smov [#allocation8]   ;;  %s2840_s21 = scalar_lea.hbm %s3464_s8, 4096 }
  0x15   :  { %s72_s18 = sshll.u32 %s2961_s17, 4  ;;  %p2841_p8 = scmp.ne.s32.totalorder %s3464_s8, %s2840_s21  ;;  %s73_s18 = int_to_ptr.vmem [resolvable:$true] %s72_s18 }
  0x16   :  { %p2844_p9 = scmp.lt.u32.totalorder %s2840_s21, %s3464_s8 }
  0x18   :  { %p2846_p10 = pnand %p2844_p9, %p2841_p8 }
  0x1a   :  { %2849 = shalt.err (!%p2846_p10)
}
  0x1b   :  { %s2850_s27 = scalar_lea.vmem %s73_s18, 4096  ;;  %p2855_p12 = scmp.lt.s32.totalorder %s73_s18, %s73_s18 }
  0x1c   :  { %p2851_p11 = scmp.ne.s32.totalorder %s73_s18, %s2850_s27  ;;  %p2856_p13 = scmp.lt.s32.totalorder %s2850_s27, %s2850_s27 }
  0x1e   :  { %p2857_p0 = por %p2856_p13, %p2855_p12 }
  0x20   :  { %p2858_p1 = pnand %p2857_p0, %p2851_p11 }
  0x22   :  { %2861 = shalt.err (!%p2858_p1)
}
  0x23   :  { %s2962_s3 = smov 256   ;;  %s2963_s22 = smov 16  }
  0x24   :  { %78 = dma.hbm_to_vmem [thread:$0]  %s3464_s8, 4096, %s73_s18, [#allocation9], %s2962_s3, %s2962_s3, %s2963_s22  }
  0x25   :  { %s2964_s30 = smov [#allocation2]   ;;  %s2862_s16 = scalar_lea.hbm %s3456_s0, 256 }
  0x26   :  { %s26_s13 = sshll.u32 %s2964_s30, 4  ;;  %p2863_p2 = scmp.ne.s32.totalorder %s3456_s0, %s2862_s16  ;;  %s27_s13 = int_to_ptr.vmem [resolvable:$true] %s26_s13 }
  0x27   :  { %p2866_p3 = scmp.lt.u32.totalorder %s2862_s16, %s3456_s0 }
  0x29   :  { %p2868_p4 = pnand %p2866_p3, %p2863_p2 }
  0x2b   :  { %2871 = shalt.err (!%p2868_p4)
}
  0x2c   :  { %s2872_s23 = scalar_lea.vmem %s27_s13, 256  ;;  %p2877_p6 = scmp.lt.s32.totalorder %s27_s13, %s27_s13 }
  0x2d   :  { %p2873_p5 = scmp.ne.s32.totalorder %s27_s13, %s2872_s23  ;;  %p2878_p7 = scmp.lt.s32.totalorder %s2872_s23, %s2872_s23 }
  0x2f   :  { %p2879_p8 = por %p2878_p7, %p2877_p6 }
  0x31   :  { %p2880_p9 = pnand %p2879_p8, %p2873_p5 }
  0x33   :  { %2883 = shalt.err (!%p2880_p9)
}
  0x34   :  { %s2965_s8 = smov 128   ;;  %s2966_s18 = smov 8  }
  0x35   :  { %32 = dma.hbm_to_vmem [thread:$0]  %s3456_s0, 256, %s27_s13, [#allocation3], %s2965_s8, %s2965_s8, %s2966_s18  }
  0x36   :  { %s2967_s26 = smov [#allocation7]   ;;  %s2884_s28 = scalar_lea.hbm %s3460_s4, 1024 }
  0x37   :  { %s54_s27 = sshll.u32 %s2967_s26, 4  ;;  %p2885_p10 = scmp.ne.s32.totalorder %s3460_s4, %s2884_s28  ;;  %s55_s27 = int_to_ptr.vmem [resolvable:$true] %s54_s27 }
  0x38   :  { %p2888_p11 = scmp.lt.u32.totalorder %s2884_s28, %s3460_s4 }
  0x3a   :  { %p2890_p12 = pnand %p2888_p11, %p2885_p10 }
  0x3c   :  { %2893 = shalt.err (!%p2890_p12)
}
  0x3d   :  { %s2894_s16 = scalar_lea.vmem %s55_s27, 1024  ;;  %p2899_p0 = scmp.lt.s32.totalorder %s55_s27, %s55_s27 }
  0x3e   :  { %p2895_p13 = scmp.ne.s32.totalorder %s55_s27, %s2894_s16  ;;  %p2900_p1 = scmp.lt.s32.totalorder %s2894_s16, %s2894_s16 }
  0x40   :  { %p2901_p2 = por %p2900_p1, %p2899_p0 }
  0x42   :  { %p2902_p3 = pnand %p2901_p2, %p2895_p13 }
  0x44   :  { %2905 = shalt.err (!%p2902_p3)
}
  0x45   :  { %s2968_s0 = smov 64   ;;  %s2969_s13 = smov 4  }
  0x46   :  { %60 = dma.hbm_to_vmem [thread:$0]  %s3460_s4, 1024, %s55_s27, [#allocation6], %s2968_s0, %s2968_s0, %s2969_s13  }
  0x47   :  { %s2970_s20 = smov [#allocation10]   ;;  %s2906_s25 = scalar_lea.hbm %s3466_s10, 4096 }
  0x48   :  { %s86_s21 = sshll.u32 %s2970_s20, 4  ;;  %p2907_p4 = scmp.ne.s32.totalorder %s3466_s10, %s2906_s25  ;;  %s87_s21 = int_to_ptr.vmem [resolvable:$true] %s86_s21 }
  0x49   :  { %p2910_p5 = scmp.lt.u32.totalorder %s2906_s25, %s3466_s10 }
  0x4b   :  { %p2912_p6 = pnand %p2910_p5, %p2907_p4 }
  0x4d   :  { %2915 = shalt.err (!%p2912_p6)
}
  0x4e   :  { %s2916_s29 = scalar_lea.vmem %s87_s21, 4096  ;;  %p2921_p8 = scmp.lt.s32.totalorder %s87_s21, %s87_s21 }
  0x4f   :  { %p2917_p7 = scmp.ne.s32.totalorder %s87_s21, %s2916_s29  ;;  %p2922_p9 = scmp.lt.s32.totalorder %s2916_s29, %s2916_s29 }
  0x51   :  { %p2923_p10 = por %p2922_p9, %p2921_p8 }
  0x53   :  { %p2924_p11 = pnand %p2923_p10, %p2917_p7 }
  0x55   :  { %2927 = shalt.err (!%p2924_p11)
}
  0x56   :  { %92 = dma.hbm_to_vmem [thread:$0]  %s3466_s10, 4096, %s87_s21, [#allocation9], %s2968_s0, %s2968_s0, %s2969_s13  }
  0x57   :  { %2950 = dma.done.wait [#allocation3], 256  }
  0x58   :  { %2951 = vsyncadd [#allocation3], 4294967040 }
  0x59   :  { %2952 = dma.done.wait [#allocation6], 4096  }
  0x5a   :  { %2953 = vsyncadd [#allocation6], 4294963200 }
  0x5b   :  { %2954 = dma.done.wait [#allocation9], 8192  }
  0x5c   :  { %2955 = vsyncadd [#allocation9], 4294959104  ;;  %v111_v0 = vld [vmem:[#allocation2] sm:$0xff]  ;;  %v112_v1 = vld [vmem:[#allocation2 + $0x8] sm:$0xff]  ;;  %v2971_v13 = vmov 0.0   ;;  %v2972_v30 = vmov 0  }
  0x5d   :  { %115 = vadd.xlane.f32.xlu0 %v111_v0  ;;  %v2632_v10 = vld [vmem:[#allocation5 + $0x4] ss:$12 sps:$4 sm:$0xff]   ;;  %v2634_v11 = vld [vmem:[#allocation5] ss:$12 sps:$4 sm:$0xff]   ;;  %v2635_v12 = vld [vmem:[#allocation5 + $0x8] ss:$12 sps:$4 sm:$0xff]   ;;  %2477 = vmatprep.subr.bf16.mxu1 %v2971_v13 }
  0x5e   :  { %329 = vmatprep.subr.bf16.mxu0 %v2632_v10  ;;  %2478 = vmatpush3.bf16.msra.mxu1 %v2635_v12  ;;  %v2636_v14 = vld [vmem:[#allocation5 + $0x1c] ss:$12 sps:$4 sm:$0xff]   ;;  %v2638_v15 = vld [vmem:[#allocation5 + $0x18] ss:$12 sps:$4 sm:$0xff]   ;;  %v2639_v16 = vld [vmem:[#allocation5 + $0x20] ss:$12 sps:$4 sm:$0xff]  }
  0x5f   :  { %330 = vmatpush1.bf16.msra.mxu0 %v2634_v11  ;;  %2479 = vmatprep.subr.bf16.mxu1 %v2971_v13  ;;  %v2640_v17 = vld [vmem:[#allocation5 + $0x34] ss:$12 sps:$4 sm:$0xff]   ;;  %v2642_v18 = vld [vmem:[#allocation5 + $0x30] ss:$12 sps:$4 sm:$0xff]   ;;  %v2643_v19 = vld [vmem:[#allocation5 + $0x38] ss:$12 sps:$4 sm:$0xff]  }
  0x60   :  { %331 = vmatprep.subr.bf16.mxu0 %v2636_v14  ;;  %v2644_v20 = vld [vmem:[#allocation5 + $0x4c] ss:$12 sps:$4 sm:$0xff]   ;;  %v2646_v21 = vld [vmem:[#allocation5 + $0x48] ss:$12 sps:$4 sm:$0xff]   ;;  %v2647_v22 = vld [vmem:[#allocation5 + $0x50] ss:$12 sps:$4 sm:$0xff]   ;;  %361 = vmatprep.mubr.bf16.mxu0 %v2972_v30 }
  0x61   :  { %117 = vadd.xlane.f32.xlu0 %v112_v1  ;;  %v2648_v23 = vld [vmem:[#allocation5 + $0x64] ss:$12 sps:$4 sm:$0xff]   ;;  %v2650_v24 = vld [vmem:[#allocation5 + $0x60] ss:$12 sps:$4 sm:$0xff]   ;;  %v2651_v25 = vld [vmem:[#allocation5 + $0x68] ss:$12 sps:$4 sm:$0xff]  }
  0x62   :  { %2480 = vmatpush3.bf16.msra.mxu1 %v2639_v16  ;;  %v2652_v26 = vld [vmem:[#allocation5 + $0x7c] ss:$12 sps:$4 sm:$0xff]   ;;  %v2654_v27 = vld [vmem:[#allocation5 + $0x78] ss:$12 sps:$4 sm:$0xff]   ;;  %v2655_v28 = vld [vmem:[#allocation5 + $0x80] ss:$12 sps:$4 sm:$0xff]   ;;  %v413_v16 = vlaneseq }
  0x63   :  { %332 = vmatpush1.bf16.msra.mxu0 %v2638_v15  ;;  %2481 = vmatprep.subr.bf16.mxu1 %v2971_v13  ;;  %v2656_v29 = vld [vmem:[#allocation5 + $0x94] ss:$12 sps:$4 sm:$0xff]   ;;  %vm2973_vm0 = vmmov 0   ;;  %v2658_v31 = vld [vmem:[#allocation5 + $0x90] ss:$12 sps:$4 sm:$0xff]   ;;  %vm436_vm5 = vcmask 261120  }
  0x64   :  { %333 = vmatprep.subr.bf16.mxu0 %v2640_v17  ;;  %2493 = vmatprep.mubr.msk.bf16.mxu1 %vm2973_vm0, %v2971_v13  ;;  %v2659_v32 = vld [vmem:[#allocation5 + $0x98] ss:$12 sps:$4 sm:$0xff]   ;;  %v2662_v34 = vld [vmem:[#allocation5 + $0xa8] ss:$12 sps:$4 sm:$0xff]   ;;  %v2663_v35 = vld [vmem:[#allocation5 + $0xb0] ss:$12 sps:$4 sm:$0xff]  }
  0x65   :  { %v2660_v33 = vld [vmem:[#allocation5 + $0xac] ss:$12 sps:$4 sm:$0xff]   ;;  %v2253_v52 = vld [vmem:[%s3457_s1] ss:$0 sm:$0xff]  ;;  %s2974_s1 = smov 96   ;;  %vm557_vm6 = vcmask 1043456  }
  0x66   :  { %2482 = vmatpush3.bf16.msra.mxu1 %v2643_v19  ;;  %v2254_v58 = vld [vmem:[%s3458_s2] ss:$0 sm:$0xff]  ;;  %v3171_v17 = vshrl.u32 %v413_v16, 7  ;;  %vm533_vm8 = vcmask 64512   ;;  %s2975_s2 = smov 32   ;;  %vm1333_vm9 = vcmask 523264  }
  0x67   :  { %334 = vmatpush1.bf16.msra.mxu0 %v2642_v18  ;;  %2483 = vmatprep.subr.bf16.mxu1 %v2971_v13  ;;  %v416_v18 = vand.u32 127, %v413_v16  ;;  %vm1336_vm10 = vcmask 785408   ;;  %s2976_s21 = smov [#allocation11]  }
  0x68   :  { %335 = vmatprep.subr.bf16.mxu0 %v2644_v20  ;;  %s2239_s23 = sshll.u32 %s2976_s21, 4  ;;  %s2240_s23 = int_to_ptr.vmem [resolvable:$true] %s2239_s23 }
  0x69   :  { %vm3174_vm7 = vcmp.le.s32.totalorder %v416_v18, %v3171_v17  ;;  %p2933_p13 = scmp.lt.s32.totalorder %s2240_s23, %s2240_s23 }
  0x6a   :  { %2484 = vmatpush3.bf16.msra.mxu1 %v2647_v22 }
  0x6b   :  { %336 = vmatpush1.bf16.msra.mxu0 %v2646_v21  ;;  %2485 = vmatprep.subr.bf16.mxu1 %v2971_v13 }
  0x6c   :  { %337 = vmatprep.subr.bf16.mxu0 %v2648_v23 }
  0x6e   :  { %2486 = vmatpush3.bf16.msra.mxu1 %v2651_v25 }
  0x6f   :  { %338 = vmatpush1.bf16.msra.mxu0 %v2650_v24  ;;  %2487 = vmatprep.subr.bf16.mxu1 %v2971_v13 }
  0x70   :  { %339 = vmatprep.subr.bf16.mxu0 %v2652_v26 }
  0x72   :  { %2488 = vmatpush3.bf16.msra.mxu1 %v2655_v28 }
  0x73   :  { %340 = vmatpush1.bf16.msra.mxu0 %v2654_v27  ;;  %2489 = vmatprep.subr.bf16.mxu1 %v2971_v13 }
  0x74   :  { %341 = vmatprep.subr.bf16.mxu0 %v2656_v29 }
  0x76   :  { %2490 = vmatpush3.bf16.msra.mxu1 %v2659_v32 }
  0x77   :  { %342 = vmatpush1.bf16.msra.mxu0 %v2658_v31  ;;  %2491 = vmatprep.subr.bf16.mxu1 %v2971_v13 }
  0x78   :  { %343 = vmatprep.subr.bf16.mxu0 %v2660_v33 }
  0x7a   :  { %2492 = vmatpush3.bf16.msra.mxu1 %v2663_v35 }
  0x7b   :  { %344 = vmatpush1.bf16.msra.mxu0 %v2662_v34  ;;  %2497 = vmatprep.subr.bf16.mxu1 %v2971_v13 }
  0x7c   :  { %2521 = vmatprep.subr.bf16.mxu0 %v2971_v13 }
  0xea   :  { %v116_v2 = vpop.xlane.xlu0 %115 }
  0xeb   :  { %v120_v3 = vmul.f32 0.0078125, %v116_v2 }
  0xed   :  { %v3109_v4 = vsub.f32 %v111_v0, %v120_v3 }
  0xee   :  { %v118_v5 = vpop.xlane.xlu0 %117 }
  0xef   :  { %v121_v6 = vmul.f32 0.0078125, %v118_v5  ;;  %v124_v7 = vmul.f32 %v3109_v4, %v3109_v4  ;;  %v138_v54 = vmul.f32 %v2253_v52, %v3109_v4 }
  0xf1   :  { %v3113_v8 = vsub.f32 %v112_v1, %v121_v6  ;;  %126 = vadd.xlane.f32.xlu1 %v124_v7 }
  0xf3   :  { %v125_v9 = vmul.f32 %v3113_v8, %v3113_v8  ;;  %v139_v55 = vmul.f32 %v2253_v52, %v3113_v8 }
  0xf5   :  { %128 = vadd.xlane.f32.xlu1 %v125_v9 }
 0x17e   :  { %v127_v36 = vpop.xlane.xlu1 %126 }
 0x17f   :  { %v130_v37 = vmul.f32 0.0078125, %v127_v36 }
 0x181   :  { %v140_v38 = vadd.f32 1e-05, %v130_v37 }
 0x182   :  { %v129_v39 = vpop.xlane.xlu1 %128 }
 0x183   :  { %2752 = vrsqrt.f32 %v140_v38  ;;  %v131_v40 = vmul.f32 0.0078125, %v129_v39  ;;  %vm144_vm1 = vcmp.eq.f32.partialorder %v140_v38, inf  ;;  %v147_v44 = vand.u32 2147483648, %v140_v38 }
 0x184   :  { %vm146_vm2 = vcmp.eq.f32.partialorder %v140_v38, 0.0 }
 0x185   :  { %v141_v41 = vadd.f32 1e-05, %v131_v40 }
 0x187   :  { %2754 = vrsqrt.f32 %v141_v41  ;;  %vm151_vm3 = vcmp.eq.f32.partialorder %v141_v41, inf  ;;  %v154_v49 = vand.u32 2147483648, %v141_v41  ;;  %vm153_vm4 = vcmp.eq.f32.partialorder %v141_v41, 0.0 }
 0x18d   :  { %v2753_v42 = vpop.eup %2752 }
 0x18e   :  { %v143_v43 = vmul.f32 %v2753_v42, %v140_v38 }
 0x190   :  { %v145_v45 = vsel %vm144_vm1, %v140_v38, %v143_v43 }
 0x191   :  { %v148_v46 = vsel %vm146_vm2, %v147_v44, %v145_v45  ;;  %v2755_v47 = vpop.eup %2754 }
 0x192   :  { %v150_v48 = vmul.f32 %v2755_v47, %v141_v41  ;;  %2756 = vrcp.f32 %v148_v46 }
 0x194   :  { %v152_v50 = vsel %vm151_vm3, %v141_v41, %v150_v48 }
 0x195   :  { %v155_v51 = vsel %vm153_vm4, %v154_v49, %v152_v50 }
 0x196   :  { %2758 = vrcp.f32 %v155_v51 }
 0x19c   :  { %v2757_v53 = vpop.eup %2756 }
 0x19d   :  { %v157_v56 = vmul.f32 %v2757_v53, %v138_v54 }
 0x19f   :  { %v166_v60 = vadd.f32 %v2254_v58, %v157_v56 }
 0x1a0   :  { %v2759_v57 = vpop.eup %2758 }
 0x1a1   :  { %v159_v59 = vmul.f32 %v2759_v57, %v139_v55 }
 0x1a3   :  { %v167_v61 = vadd.f32 %v2254_v58, %v159_v59 }
 0x1a5   :  { %v168_v62 = vpack.c.bf16 %v167_v61, %v166_v60 }
 0x1a7   :  { %362 = vmatmul.mubr.bf16.vlgmr.msra.gmra.mrb[0].mxu0 %v168_v62  ;;  %2494 = vmatmul.mubr.bf16.vlgmr.msra.gmra.mrb[0].mxu1 %v168_v62 }
 0x1a8   :  { %2499 = vmatprep.mubr.msk.bf16.mxu1 %vm2973_vm0, %v2971_v13  ;;  %2523 = vmatprep.mubr.msk.bf16.mxu0 %vm2973_vm0, %v2971_v13 }
 0x27a   :  { %v363_v63 = vpop.f32.mrb[0].mxu0  ;;  %v406_v0 = vpop.f32.mrb[0].mxu1 }
 0x27b   :  { %v365_v1 = vpop.f32.mrb[1].mxu0  ;;  %v2495_v2 = vpop.f32.mrb[1].mxu1  ;;  %v3151_v10 = vpack.c.bf16 %v363_v63, %v363_v63  ;;  %v3160_v12 = vpack.c.bf16 %v406_v0, %v406_v0 }
 0x27c   :  { %v3142_v3 = vpack.c.bf16 %v365_v1, %v365_v1  ;;  %v367_v4 = vpop.f32.mrb[2].mxu0  ;;  %v409_v5 = vpop.f32.mrb[2].mxu1 }
 0x27d   :  { %v369_v6 = vpop.f32.mrb[3].mxu0  ;;  %v2496_v7 = vpop.f32.mrb[3].mxu1  ;;  %v3162_v14 = vpack.c.bf16 %v367_v4, %v367_v4  ;;  %v559_v15 = vsel %vm557_vm6, %v3160_v12, 0  ;;  %v3192_v33 = vpack.c.bf16 %v409_v5, %v409_v5 }
 0x27e   :  { %v3144_v8 = vpack.c.bf16 %v369_v6, %v369_v6  ;;  %v441_v9 = vsel %vm436_vm5, %v3142_v3, 0 }
 0x27f   :  { %2498 = vmatpush3.bf16.xpose.msra.mxu1 %v441_v9  ;;  %v605_v48 = vsel %vm557_vm6, %v3192_v33, 0 }
 0x280   :  { %704 = vrot.lane.b32.xlu1 %v3144_v8, %s2974_s1  ;;  %2503 = vmatprep.subr.bf16.mxu1 %v2971_v13  ;;  %v487_v11 = vsel %vm436_vm5, %v3144_v8, 0 }
 0x286   :  { %2500 = vmatmul.mubr.msk.bf16.vlgmr.msra.gmra.mrb[4].mxu1 %vm436_vm5, %v3151_v10 }
 0x287   :  { %2504 = vmatpush3.bf16.xpose.msra.mxu1 %v487_v11  ;;  %2505 = vmatprep.mubr.msk.bf16.mxu1 %vm2973_vm0, %v2971_v13 }
 0x288   :  { %2509 = vmatprep.subr.bf16.mxu1 %v2971_v13 }
 0x28e   :  { %2506 = vmatmul.mubr.msk.bf16.vlgmr.msra.gmra.mrb[8].mxu1 %vm436_vm5, %v3162_v14 }
 0x28f   :  { %2510 = vmatpush3.bf16.msra.mxu1 %v559_v15  ;;  %2511 = vmatprep.mubr.msk.bf16.mxu1 %vm2973_vm0, %v2971_v13 }
 0x290   :  { %2515 = vmatprep.subr.bf16.mxu1 %v2971_v13 }
 0x2f2   :  { %v705_v37 = vpop.permute.xlu1 %704 }
 0x2f3   :  { %v710_v52 = vsel %vm436_vm5, %v705_v37, 0 }
 0x359   :  { %v477_v20 = vpop.f32.mrb[4].mxu1 }
 0x35a   :  { %v531_v21 = vsel %vm3174_vm7, %v477_v20, -2.3819763e+38  ;;  %v2501_v22 = vpop.f32.mrb[5].mxu1 }
 0x35b   :  { %v480_v23 = vpop.f32.mrb[6].mxu1  ;;  %v534_v24 = vsel %vm533_vm8, %v531_v21, -inf }
 0x35c   :  { %535 = vmax.xlane.f32.xlu0 %v534_v24  ;;  %v2502_v25 = vpop.f32.mrb[7].mxu1 }
 0x361   :  { %v523_v26 = vpop.f32.mrb[8].mxu1 }
 0x362   :  { %v532_v27 = vsel %vm3174_vm7, %v523_v26, -2.3819763e+38  ;;  %v2507_v28 = vpop.f32.mrb[9].mxu1 }
 0x363   :  { %v526_v29 = vpop.f32.mrb[10].mxu1  ;;  %v537_v31 = vsel %vm533_vm8, %v532_v27, -inf }
 0x364   :  { %538 = vmax.xlane.f32.xlu1 %v537_v31  ;;  %v2508_v32 = vpop.f32.mrb[11].mxu1 }
 0x372   :  { %654 = vrot.lane.b32.xlu0 %v3142_v3, %s2974_s1 }
 0x375   :  { %652 = vrot.lane.b32.xlu1 %v3151_v10, %s2974_s1 }
 0x376   :  { %774 = vrot.lane.b32.xlu0 %v3160_v12, %s2974_s1 }
 0x379   :  { %702 = vrot.lane.b32.xlu1 %v3162_v14, %s2974_s1 }
 0x37d   :  { %822 = vrot.lane.b32.xlu1 %v3192_v33, %s2974_s1 }
 0x3e9   :  { %v536_v34 = vpop.xlane.xlu0 %535 }
 0x3ea   :  { %v540_v35 = vsub.f32 %v531_v21, %v536_v34 }
 0x3ec   :  { %v542_v36 = vmul.f32 1.442695, %v540_v35 }
 0x3ed   :  { %v655_v38 = vpop.permute.xlu0 %654 }
 0x3ee   :  { %2760 = vpow2.f32 %v542_v36  ;;  %v660_v39 = vsel %vm436_vm5, %v655_v38, 0 }
 0x3ef   :  { %2522 = vmatpush3.bf16.xpose.msra.mxu0 %v660_v39 }
 0x3f0   :  { %2533 = vmatprep.subr.bf16.mxu0 %v2971_v13 }
 0x3f1   :  { %v539_v40 = vpop.xlane.xlu1 %538  ;;  %v775_v42 = vpop.permute.xlu0 %774 }
 0x3f2   :  { %v541_v41 = vsub.f32 %v532_v27, %v539_v40  ;;  %v780_v45 = vsel %vm557_vm6, %v775_v42, 0 }
 0x3f4   :  { %v544_v43 = vmul.f32 1.442695, %v541_v41 }
 0x3f5   :  { %v653_v44 = vpop.permute.xlu1 %652 }
 0x3f6   :  { %2762 = vpow2.f32 %v544_v43  ;;  %2524 = vmatmul.mubr.msk.bf16.vlgmr.msra.gmra.mrb[4].mxu0 %vm436_vm5, %v653_v44 }
 0x3f7   :  { %2534 = vmatpush3.bf16.msra.mxu0 %v780_v45  ;;  %2535 = vmatprep.mubr.msk.bf16.mxu0 %vm2973_vm0, %v2971_v13 }
 0x3f8   :  { %v3202_v46 = vpop.eup %2760  ;;  %2545 = vmatprep.subr.bf16.mxu0 %v2971_v13 }
 0x3f9   :  { %v552_v47 = vpack.c.bf16 %v3202_v46, %v3202_v46  ;;  %v703_v51 = vpop.permute.xlu1 %702 }
 0x3fb   :  { %2512 = vmatmul.mubr.msk.bf16.vlgmr.msra.gmra.mrb[12].mxu1 %vm533_vm8, %v552_v47 }
 0x3fc   :  { %2516 = vmatpush3.bf16.msra.mxu1 %v605_v48  ;;  %2517 = vmatprep.mubr.msk.bf16.mxu1 %vm2973_vm0, %v2971_v13 }
 0x3fd   :  { %2527 = vmatprep.subr.bf16.mxu1 %v2971_v13  ;;  %v823_v53 = vpop.permute.xlu1 %822 }
 0x3fe   :  { %v828_v54 = vsel %vm557_vm6, %v823_v53, 0 }
 0x400   :  { %v3213_v49 = vpop.eup %2762 }
 0x401   :  { %v553_v50 = vpack.c.bf16 %v3213_v49, %v3213_v49 }
 0x403   :  { %2518 = vmatmul.mubr.msk.bf16.vlgmr.msra.gmra.mrb[16].mxu1 %vm533_vm8, %v553_v50 }
 0x404   :  { %2529 = vmatprep.mubr.msk.bf16.mxu1 %vm2973_vm0, %v2971_v13 }
 0x405   :  { %2528 = vmatpush3.bf16.xpose.msra.mxu1 %v710_v52 }
 0x406   :  { %2539 = vmatprep.subr.bf16.mxu1 %v2971_v13 }
 0x40c   :  { %2530 = vmatmul.mubr.msk.bf16.vlgmr.msra.gmra.mrb[20].mxu1 %vm436_vm5, %v703_v51 }
 0x40d   :  { %2540 = vmatpush3.bf16.msra.mxu1 %v828_v54  ;;  %2541 = vmatprep.mubr.msk.bf16.mxu1 %vm2973_vm0, %v2971_v13 }
 0x40e   :  { %2551 = vmatprep.subr.bf16.mxu1 %v2971_v13 }
 0x4c9   :  { %v696_v55 = vpop.f32.mrb[4].mxu0 }
 0x4ca   :  { %v752_v56 = vsel %vm3174_vm7, %v696_v55, -2.3819763e+38  ;;  %v2525_v57 = vpop.f32.mrb[5].mxu0 }
 0x4cb   :  { %v699_v58 = vpop.f32.mrb[6].mxu0  ;;  %v754_v59 = vsel %vm533_vm8, %v752_v56, -inf }
 0x4cc   :  { %755 = vmax.xlane.f32.xlu0 %v754_v59  ;;  %v2526_v60 = vpop.f32.mrb[7].mxu0 }
 0x4ce   :  { %v3230_v61 = vpop.f32.mrb[12].mxu1 }
 0x4cf   :  { %v2513_v62 = vpop.f32.mrb[13].mxu1 }
 0x4d0   :  { %v598_v63 = vpop.f32.mrb[14].mxu1 }
 0x4d1   :  { %v2514_v0 = vpop.f32.mrb[15].mxu1 }
 0x4d6   :  { %v3232_v1 = vpop.f32.mrb[16].mxu1 }
 0x4d7   :  { %v2519_v2 = vpop.f32.mrb[17].mxu1 }
 0x4d8   :  { %v644_v4 = vpop.f32.mrb[18].mxu1 }
 0x4d9   :  { %v2520_v5 = vpop.f32.mrb[19].mxu1 }
 0x4df   :  { %v746_v6 = vpop.f32.mrb[20].mxu1 }
 0x4e0   :  { %v753_v7 = vsel %vm3174_vm7, %v746_v6, -2.3819763e+38  ;;  %v2531_v9 = vpop.f32.mrb[21].mxu1 }
 0x4e1   :  { %v749_v11 = vpop.f32.mrb[22].mxu1  ;;  %v757_v15 = vsel %vm533_vm8, %v753_v7, -inf }
 0x4e2   :  { %758 = vmax.xlane.f32.xlu1 %v757_v15  ;;  %v2532_v16 = vpop.f32.mrb[23].mxu1  ;;  %877 = vrot.lane.b32.xlu0 %v3142_v3, %s2968_s0 }
 0x4e6   :  { %875 = vrot.lane.b32.xlu0 %v3151_v10, %s2968_s0 }
 0x4ea   :  { %997 = vrot.lane.b32.xlu0 %v3160_v12, %s2968_s0 }
 0x4f3   :  { %927 = vrot.lane.b32.xlu1 %v3144_v8, %s2968_s0 }
 0x4f7   :  { %925 = vrot.lane.b32.xlu1 %v3162_v14, %s2968_s0 }
 0x4fb   :  { %1045 = vrot.lane.b32.xlu1 %v3192_v33, %s2968_s0 }
 0x559   :  { %v756_v18 = vpop.xlane.xlu0 %755 }
 0x55a   :  { %v760_v20 = vsub.f32 %v752_v56, %v756_v18 }
 0x55c   :  { %v762_v21 = vmul.f32 1.442695, %v760_v20 }
 0x55d   :  { %v878_v22 = vpop.permute.xlu0 %877 }
 0x55e   :  { %2764 = vpow2.f32 %v762_v21  ;;  %v883_v26 = vsel %vm436_vm5, %v878_v22, 0 }
 0x561   :  { %v876_v25 = vpop.permute.xlu0 %875 }
 0x565   :  { %v998_v28 = vpop.permute.xlu0 %997 }
 0x566   :  { %v1003_v32 = vsel %vm557_vm6, %v998_v28, 0 }
 0x568   :  { %v3249_v23 = vpop.eup %2764 }
 0x569   :  { %v772_v24 = vpack.c.bf16 %v3249_v23, %v3249_v23 }
 0x56b   :  { %2536 = vmatmul.mubr.msk.bf16.vlgmr.msra.gmra.mrb[8].mxu0 %vm533_vm8, %v772_v24 }
 0x56c   :  { %2546 = vmatpush3.bf16.xpose.msra.mxu0 %v883_v26  ;;  %2547 = vmatprep.mubr.msk.bf16.mxu0 %vm2973_vm0, %v2971_v13 }
 0x56d   :  { %2557 = vmatprep.subr.bf16.mxu0 %v2971_v13 }
 0x56f   :  { %v759_v27 = vpop.xlane.xlu1 %758 }
 0x570   :  { %v761_v29 = vsub.f32 %v753_v7, %v759_v27 }
 0x572   :  { %v764_v31 = vmul.f32 1.442695, %v761_v29 }
 0x573   :  { %2548 = vmatmul.mubr.msk.bf16.vlgmr.msra.gmra.mrb[12].mxu0 %vm436_vm5, %v876_v25  ;;  %v928_v34 = vpop.permute.xlu1 %927 }
 0x574   :  { %2766 = vpow2.f32 %v764_v31  ;;  %2558 = vmatpush3.bf16.msra.mxu0 %v1003_v32  ;;  %2559 = vmatprep.mubr.msk.bf16.mxu0 %vm2973_vm0, %v2971_v13  ;;  %v933_v38 = vsel %vm436_vm5, %v928_v34, 0 }
 0x575   :  { %2569 = vmatprep.subr.bf16.mxu0 %v2971_v13 }
 0x577   :  { %v926_v37 = vpop.permute.xlu1 %925 }
 0x57b   :  { %v1046_v39 = vpop.permute.xlu1 %1045 }
 0x57c   :  { %v1051_v40 = vsel %vm557_vm6, %v1046_v39, 0 }
 0x57e   :  { %v3263_v35 = vpop.eup %2766 }
 0x57f   :  { %v773_v36 = vpack.c.bf16 %v3263_v35, %v3263_v35 }
 0x581   :  { %2542 = vmatmul.mubr.msk.bf16.vlgmr.msra.gmra.mrb[24].mxu1 %vm533_vm8, %v773_v36 }
 0x582   :  { %2552 = vmatpush3.bf16.xpose.msra.mxu1 %v933_v38  ;;  %2553 = vmatprep.mubr.msk.bf16.mxu1 %vm2973_vm0, %v2971_v13 }
 0x583   :  { %2563 = vmatprep.subr.bf16.mxu1 %v2971_v13 }
 0x589   :  { %2554 = vmatmul.mubr.msk.bf16.vlgmr.msra.gmra.mrb[28].mxu1 %vm436_vm5, %v926_v37 }
 0x58a   :  { %2564 = vmatpush3.bf16.msra.mxu1 %v1051_v40  ;;  %2565 = vmatprep.mubr.msk.bf16.mxu1 %vm2973_vm0, %v2971_v13 }
 0x58b   :  { %2575 = vmatprep.subr.bf16.mxu1 %v2971_v13 }
 0x63e   :  { %v3277_v41 = vpop.f32.mrb[8].mxu0 }
 0x63f   :  { %v2537_v42 = vpop.f32.mrb[9].mxu0 }
 0x640   :  { %v819_v43 = vpop.f32.mrb[10].mxu0 }
 0x641   :  { %v2538_v44 = vpop.f32.mrb[11].mxu0 }
 0x646   :  { %v919_v45 = vpop.f32.mrb[12].mxu0 }
 0x647   :  { %v975_v47 = vsel %vm3174_vm7, %v919_v45, -2.3819763e+38  ;;  %v2549_v48 = vpop.f32.mrb[13].mxu0 }
 0x648   :  { %v922_v50 = vpop.f32.mrb[14].mxu0  ;;  %v977_v51 = vsel %vm533_vm8, %v975_v47, -inf }
 0x649   :  { %978 = vmax.xlane.f32.xlu0 %v977_v51  ;;  %v2550_v52 = vpop.f32.mrb[15].mxu0  ;;  %v769_v50 = vsel %vm533_vm8, %v3263_v35, 0.0  ;;  %v546_v35 = vsel %vm533_vm8, %v3202_v46, 0.0  ;;  %v549_v46 = vsel %vm533_vm8, %v3213_v49, 0.0 }
 0x654   :  { %v3282_v53 = vpop.f32.mrb[24].mxu1 }
 0x655   :  { %v2543_v54 = vpop.f32.mrb[25].mxu1 }
 0x656   :  { %v867_v55 = vpop.f32.mrb[26].mxu1 }
 0x657   :  { %v2544_v56 = vpop.f32.mrb[27].mxu1 }
 0x65c   :  { %v969_v57 = vpop.f32.mrb[28].mxu1 }
 0x65d   :  { %v976_v58 = vsel %vm3174_vm7, %v969_v57, -2.3819763e+38  ;;  %v2555_v59 = vpop.f32.mrb[29].mxu1 }
 0x65e   :  { %v972_v60 = vpop.f32.mrb[30].mxu1  ;;  %v980_v62 = vsel %vm533_vm8, %v976_v58, -inf }
 0x65f   :  { %981 = vmax.xlane.f32.xlu1 %v980_v62  ;;  %v2556_v63 = vpop.f32.mrb[31].mxu1  ;;  %1100 = vrot.lane.b32.xlu0 %v3142_v3, %s2975_s2 }
 0x663   :  { %1098 = vrot.lane.b32.xlu0 %v3151_v10, %s2975_s2 }
 0x670   :  { %1150 = vrot.lane.b32.xlu1 %v3144_v8, %s2975_s2 }
 0x674   :  { %1148 = vrot.lane.b32.xlu1 %v3162_v14, %s2975_s2 }
 0x6d6   :  { %v979_v0 = vpop.xlane.xlu0 %978 }
 0x6d7   :  { %v983_v2 = vsub.f32 %v975_v47, %v979_v0  ;;  %v766_v47 = vsel %vm533_vm8, %v3249_v23, 0.0 }
 0x6d9   :  { %v985_v4 = vmul.f32 1.442695, %v983_v2 }
 0x6da   :  { %v1101_v6 = vpop.permute.xlu0 %1100 }
 0x6db   :  { %2768 = vpow2.f32 %v985_v4  ;;  %v1106_v9 = vsel %vm436_vm5, %v1101_v6, 0 }
 0x6de   :  { %v1099_v10 = vpop.permute.xlu0 %1098 }
 0x6e5   :  { %v2769_v5 = vpop.eup %2768 }
 0x6e6   :  { %v995_v7 = vpack.c.bf16 %v2769_v5, %v2769_v5  ;;  %v989_v48 = vsel %vm533_vm8, %v2769_v5, 0.0 }
 0x6e8   :  { %2560 = vmatmul.mubr.msk.bf16.vlgmr.msra.gmra.mrb[16].mxu0 %vm533_vm8, %v995_v7 }
 0x6e9   :  { %2570 = vmatpush3.bf16.xpose.msra.mxu0 %v1106_v9  ;;  %2571 = vmatprep.mubr.msk.bf16.mxu0 %vm2973_vm0, %v2971_v13 }
 0x6ea   :  { %2581 = vmatprep.subr.bf16.mxu0 %v2971_v13 }
 0x6ec   :  { %v982_v3 = vpop.xlane.xlu1 %981 }
 0x6ed   :  { %v984_v8 = vsub.f32 %v976_v58, %v982_v3 }
 0x6ef   :  { %v987_v14 = vmul.f32 1.442695, %v984_v8 }
 0x6f0   :  { %2572 = vmatmul.mubr.msk.bf16.vlgmr.msra.gmra.mrb[20].mxu0 %vm436_vm5, %v1099_v10  ;;  %v1151_v15 = vpop.permute.xlu1 %1150 }
 0x6f1   :  { %2770 = vpow2.f32 %v987_v14  ;;  %2583 = vmatprep.mubr.msk.bf16.mxu0 %vm2973_vm0, %v2971_v13  ;;  %v1156_v18 = vsel %vm436_vm5, %v1151_v15, 0 }
 0x6f4   :  { %v1149_v20 = vpop.permute.xlu1 %1148 }
 0x6fb   :  { %v2771_v11 = vpop.eup %2770 }
 0x6fc   :  { %v996_v16 = vpack.c.bf16 %v2771_v11, %v2771_v11  ;;  %v992_v19 = vsel %vm533_vm8, %v2771_v11, 0.0 }
 0x6fe   :  { %2566 = vmatmul.mubr.msk.bf16.vlgmr.msra.gmra.mrb[32].mxu1 %vm533_vm8, %v996_v16 }
 0x6ff   :  { %2576 = vmatpush3.bf16.xpose.msra.mxu1 %v1156_v18  ;;  %2577 = vmatprep.mubr.msk.bf16.mxu1 %vm2973_vm0, %v2971_v13 }
 0x700   :  { %2587 = vmatprep.subr.bf16.mxu1 %v2971_v13 }
 0x706   :  { %2578 = vmatmul.mubr.msk.bf16.vlgmr.msra.gmra.mrb[36].mxu1 %vm436_vm5, %v1149_v20  ;;  %v2664_v20 = vld [vmem:[#allocation7] sm:$0xff]  }
 0x707   :  { %2589 = vmatprep.mubr.msk.bf16.mxu1 %vm2973_vm0, %v2971_v13 }
 0x7bb   :  { %v3311_v21 = vpop.f32.mrb[16].mxu0 }
 0x7bc   :  { %v2561_v22 = vpop.f32.mrb[17].mxu0 }
 0x7bd   :  { %v1042_v24 = vpop.f32.mrb[18].mxu0  ;;  %v2665_v22 = vld [vmem:[#allocation7 + $0x8] sm:$0xff]  }
 0x7be   :  { %v2562_v25 = vpop.f32.mrb[19].mxu0  ;;  %v2667_v24 = vld [vmem:[#allocation7 + $0x18] sm:$0xff]  }
 0x7bf   :  { %v2670_v25 = vld [vmem:[#allocation7 + $0x30] sm:$0xff]  }
 0x7c3   :  { %v1142_v26 = vpop.f32.mrb[20].mxu0 }
 0x7c4   :  { %v1198_v27 = vsel %vm3174_vm7, %v1142_v26, -2.3819763e+38  ;;  %v2573_v28 = vpop.f32.mrb[21].mxu0  ;;  %v2671_v26 = vld [vmem:[#allocation7 + $0x38] sm:$0xff]  }
 0x7c5   :  { %v1145_v29 = vpop.f32.mrb[22].mxu0  ;;  %v1200_v31 = vsel %vm533_vm8, %v1198_v27, -inf }
 0x7c6   :  { %1201 = vmax.xlane.f32.xlu0 %v1200_v31  ;;  %v2574_v32 = vpop.f32.mrb[23].mxu0 }
 0x7d1   :  { %v1087_v34 = vpop.f32.mrb[32].mxu1 }
 0x7d2   :  { %v2567_v36 = vpop.f32.mrb[33].mxu1 }
 0x7d3   :  { %v1090_v37 = vpop.f32.mrb[34].mxu1 }
 0x7d4   :  { %v2568_v38 = vpop.f32.mrb[35].mxu1 }
 0x7d9   :  { %v1192_v39 = vpop.f32.mrb[36].mxu1 }
 0x7da   :  { %v1199_v40 = vsel %vm3174_vm7, %v1192_v39, -2.3819763e+38  ;;  %v2579_v42 = vpop.f32.mrb[37].mxu1 }
 0x7db   :  { %v1195_v43 = vpop.f32.mrb[38].mxu1  ;;  %v1203_v44 = vsel %vm533_vm8, %v1199_v40, -inf }
 0x7dc   :  { %1204 = vmax.xlane.f32.xlu1 %v1203_v44  ;;  %v2580_v45 = vpop.f32.mrb[39].mxu1  ;;  %1220 = vrot.lane.b32.xlu0 %v3160_v12, %s2975_s2 }
 0x7ed   :  { %1268 = vrot.lane.b32.xlu1 %v3192_v33, %s2975_s2 }
 0x7fb   :  { %767 = vadd.xlane.f32.xlu0 %v766_v47 }
 0x7ff   :  { %990 = vadd.xlane.f32.xlu0 %v989_v48 }
 0x803   :  { %993 = vadd.xlane.f32.xlu0 %v992_v19 }
 0x811   :  { %770 = vadd.xlane.f32.xlu1 %v769_v50 }
 0x853   :  { %v1202_v51 = vpop.xlane.xlu0 %1201 }
 0x854   :  { %v1206_v52 = vsub.f32 %v1198_v27, %v1202_v51 }
 0x856   :  { %v1208_v12 = vmul.f32 1.442695, %v1206_v52 }
 0x857   :  { %v1221_v54 = vpop.permute.xlu0 %1220 }
 0x858   :  { %2772 = vpow2.f32 %v1208_v12  ;;  %v1226_v33 = vsel %vm557_vm6, %v1221_v54, 0 }
 0x859   :  { %2582 = vmatpush3.bf16.msra.mxu0 %v1226_v33 }
 0x85a   :  { %2593 = vmatprep.subr.bf16.mxu0 %v2971_v13 }
 0x862   :  { %v2773_v23 = vpop.eup %2772 }
 0x863   :  { %v1212_v55 = vsel %vm533_vm8, %v2773_v23, 0.0  ;;  %v1218_v56 = vpack.c.bf16 %v2773_v23, %v2773_v23 }
 0x864   :  { %1213 = vadd.xlane.f32.xlu0 %v1212_v55  ;;  %v2301_v55 = vld [vmem:[%s3461_s5] ss:$0 sm:$0xff] }
 0x865   :  { %2584 = vmatmul.mubr.msk.bf16.vlgmr.msra.gmra.mrb[24].mxu0 %vm533_vm8, %v1218_v56 }
 0x866   :  { %2609 = vmatprep.mubr.msk.bf16.mxu0 %vm2973_vm0, %v2971_v13  ;;  %2594 = vmatpush3.bf16.msra.mxu0 %v2664_v20  ;;  %v2686_v20 = vld [vmem:[#allocation8 + $0x44] ss:$16 sps:$4 sm:$0xff]  }
 0x867   :  { %2595 = vmatprep.subr.bf16.mxu0 %v2971_v13 }
 0x868   :  { %547 = vadd.xlane.f32.xlu0 %v546_v35 }
 0x869   :  { %v1205_v57 = vpop.xlane.xlu1 %1204 }
 0x86a   :  { %v1207_v58 = vsub.f32 %v1199_v40, %v1205_v57  ;;  %2596 = vmatpush3.bf16.msra.mxu0 %v2665_v22  ;;  %v2689_v22 = vld [vmem:[#allocation8 + $0x4c] ss:$16 sps:$4 sm:$0xff]  }
 0x86b   :  { %2597 = vmatprep.subr.bf16.mxu0 %v2971_v13 }
 0x86c   :  { %v1210_v59 = vmul.f32 1.442695, %v1207_v58 }
 0x86d   :  { %v1269_v60 = vpop.permute.xlu1 %1268 }
 0x86e   :  { %2774 = vpow2.f32 %v1210_v59  ;;  %v1274_v62 = vsel %vm557_vm6, %v1269_v60, 0  ;;  %v2816_v59 = vld [vmem:[#allocation2] sm:$0xff] }
 0x86f   :  { %2588 = vmatpush3.bf16.msra.mxu1 %v1274_v62 }
 0x878   :  { %v2775_v63 = vpop.eup %2774 }
 0x879   :  { %v1215_v0 = vsel %vm533_vm8, %v2775_v63, 0.0  ;;  %v1219_v2 = vpack.c.bf16 %v2775_v63, %v2775_v63 }
 0x87a   :  { %1216 = vadd.xlane.f32.xlu1 %v1215_v0  ;;  %v2817_v0 = vld [vmem:[#allocation2 + $0x8] sm:$0xff] }
 0x87b   :  { %2590 = vmatmul.mubr.msk.bf16.vlgmr.msra.gmra.mrb[40].mxu1 %vm533_vm8, %v1219_v2 }
 0x87c   :  { %1755 = vmatprep.mubr.bf16.mxu1 %v2972_v30 }
 0x87e   :  { %550 = vadd.xlane.f32.xlu1 %v549_v46 }
 0x888   :  { %v768_v4 = vpop.xlane.xlu0 %767 }
 0x88c   :  { %v991_v5 = vpop.xlane.xlu0 %990 }
 0x88d   :  { %2776 = vrcp.f32 %v991_v5 }
 0x890   :  { %v994_v6 = vpop.xlane.xlu0 %993 }
 0x891   :  { %2778 = vrcp.f32 %v994_v6 }
 0x892   :  { %2780 = vrcp.f32 %v768_v4 }
 0x897   :  { %v2777_v7 = vpop.eup %2776 }
 0x898   :  { %v1095_v3 = vmul.f32 %v2777_v7, %v3311_v21  ;;  %v2666_v21 = vld [vmem:[#allocation7 + $0x10] sm:$0xff]  }
 0x899   :  { %2598 = vmatpush3.bf16.msra.mxu0 %v2666_v21  ;;  %v2684_v21 = vld [vmem:[#allocation8 + $0x40] ss:$16 sps:$4 sm:$0xff]  }
 0x89a   :  { %2599 = vmatprep.subr.bf16.mxu0 %v2971_v13 }
 0x89b   :  { %v2779_v9 = vpop.eup %2778 }
 0x89c   :  { %v1096_v8 = vmul.f32 %v2779_v9, %v1087_v34  ;;  %v2781_v11 = vpop.eup %2780 }
 0x89d   :  { %v872_v49 = vmul.f32 %v2781_v11, %v3277_v41  ;;  %2600 = vmatpush3.bf16.msra.mxu0 %v2667_v24  ;;  %v2668_v41 = vld [vmem:[#allocation7 + $0x20] sm:$0xff]   ;;  %v2675_v11 = vld [vmem:[#allocation8 + $0x8] ss:$16 sps:$4 sm:$0xff]  }
 0x89e   :  { %v771_v10 = vpop.xlane.xlu1 %770  ;;  %v1097_v14 = vpack.c.bf16 %v1096_v8, %v1095_v3  ;;  %2601 = vmatprep.subr.bf16.mxu0 %v2971_v13  ;;  %v2674_v8 = vld [vmem:[#allocation8 + $0x4] ss:$16 sps:$4 sm:$0xff]   ;;  %v2687_v24 = vld [vmem:[#allocation8 + $0x48] ss:$16 sps:$4 sm:$0xff]  }
 0x89f   :  { %2782 = vrcp.f32 %v771_v10  ;;  %v2677_v10 = vld [vmem:[#allocation8 + $0xc] ss:$16 sps:$4 sm:$0xff]   ;;  %1723 = vmatprep.subr.bf16.mxu1 %v2674_v8  ;;  %v2720_v8 = vld [vmem:[#allocation10 + $0x40] sm:$0xff]  }
 0x8a0   :  { %1325 = vrot.lane.b32.xlu1 %v1097_v14, %s2968_s0  ;;  %v2672_v14 = vld [vmem:[#allocation8] ss:$16 sps:$4 sm:$0xff]  }
 0x8a1   :  { %2602 = vmatpush3.bf16.msra.mxu0 %v2668_v41  ;;  %1724 = vmatpush1.bf16.msra.mxu1 %v2672_v14  ;;  %v2692_v41 = vld [vmem:[#allocation8 + $0x64] ss:$16 sps:$4 sm:$0xff]  }
 0x8a2   :  { %2603 = vmatprep.subr.bf16.mxu0 %v2971_v13  ;;  %v2722_v14 = vld [vmem:[#allocation10] sm:$0xff]  }
 0x8a9   :  { %v2783_v15 = vpop.eup %2782 }
 0x8aa   :  { %v873_v16 = vmul.f32 %v2783_v15, %v3282_v53  ;;  %v2669_v53 = vld [vmem:[#allocation7 + $0x28] sm:$0xff]   ;;  %v2680_v15 = vld [vmem:[#allocation8 + $0x24] ss:$16 sps:$4 sm:$0xff]  }
 0x8ab   :  { %2604 = vmatpush3.bf16.msra.mxu0 %v2669_v53  ;;  %1725 = vmatprep.subr.bf16.mxu1 %v2680_v15  ;;  %v2695_v53 = vld [vmem:[#allocation8 + $0x6c] ss:$16 sps:$4 sm:$0xff]  }
 0x8ac   :  { %v874_v18 = vpack.c.bf16 %v873_v16, %v872_v49  ;;  %2605 = vmatprep.subr.bf16.mxu0 %v2971_v13  ;;  %v2683_v49 = vld [vmem:[#allocation8 + $0x2c] ss:$16 sps:$4 sm:$0xff]   ;;  %v2678_v16 = vld [vmem:[#allocation8 + $0x20] ss:$16 sps:$4 sm:$0xff]  }
 0x8ad   :  { %1726 = vmatpush1.bf16.msra.mxu1 %v2678_v16  ;;  %v2726_v15 = vld [vmem:[#allocation10 + $0x8] sm:$0xff]   ;;  %v2728_v16 = vld [vmem:[#allocation10 + $0x50] sm:$0xff]  }
 0x8ae   :  { %1322 = vrot.lane.b32.xlu0 %v874_v18, %s2975_s2  ;;  %v2681_v18 = vld [vmem:[#allocation8 + $0x28] ss:$16 sps:$4 sm:$0xff]   ;;  %1727 = vmatprep.subr.bf16.mxu1 %v2686_v20  ;;  %v2730_v20 = vld [vmem:[#allocation10 + $0x10] sm:$0xff]  }
 0x8af   :  { %2606 = vmatpush3.bf16.msra.mxu0 %v2670_v25  ;;  %v2690_v25 = vld [vmem:[#allocation8 + $0x60] ss:$16 sps:$4 sm:$0xff]  }
 0x8b0   :  { %2607 = vmatprep.subr.bf16.mxu0 %v2971_v13 }
 0x8b1   :  { %1728 = vmatpush1.bf16.msra.mxu1 %v2684_v21  ;;  %v2732_v21 = vld [vmem:[#allocation10 + $0x58] sm:$0xff]  }
 0x8b2   :  { %1729 = vmatprep.subr.bf16.mxu1 %v2692_v41  ;;  %v2734_v41 = vld [vmem:[#allocation10 + $0x18] sm:$0xff]  }
 0x8b3   :  { %2608 = vmatpush3.bf16.msra.mxu0 %v2671_v26  ;;  %v2693_v26 = vld [vmem:[#allocation8 + $0x68] ss:$16 sps:$4 sm:$0xff]  }
 0x8b4   :  { %1766 = vmatprep.subr.bf16.mxu0 %v2677_v10  ;;  %v2721_v10 = vld [vmem:[#allocation10 + $0xc0] sm:$0xff]  }
 0x8b5   :  { %1730 = vmatpush1.bf16.msra.mxu1 %v2690_v25  ;;  %v2736_v25 = vld [vmem:[#allocation10 + $0x60] sm:$0xff]  }
 0x8f1   :  { %v1214_v27 = vpop.xlane.xlu0 %1213 }
 0x8f5   :  { %v548_v28 = vpop.xlane.xlu0 %547 }
 0x8f6   :  { %2784 = vrcp.f32 %v548_v28  ;;  %v2701_v28 = vld [vmem:[#allocation8 + $0x8c] ss:$16 sps:$4 sm:$0xff]  }
 0x900   :  { %v2785_v32 = vpop.eup %2784 }
 0x901   :  { %v649_v36 = vmul.f32 %v2785_v32, %v3230_v61  ;;  %v2704_v32 = vld [vmem:[#allocation8 + $0xa4] ss:$16 sps:$4 sm:$0xff]  }
 0x907   :  { %v1217_v29 = vpop.xlane.xlu1 %1216 }
 0x90b   :  { %v551_v31 = vpop.xlane.xlu1 %550 }
 0x90c   :  { %2786 = vrcp.f32 %v551_v31  ;;  %v2699_v31 = vld [vmem:[#allocation8 + $0x88] ss:$16 sps:$4 sm:$0xff]  }
 0x90d   :  { %2788 = vrcp.f32 %v1214_v27  ;;  %v2698_v27 = vld [vmem:[#allocation8 + $0x84] ss:$16 sps:$4 sm:$0xff]  }
 0x90e   :  { %2790 = vrcp.f32 %v1217_v29  ;;  %v2696_v29 = vld [vmem:[#allocation8 + $0x80] ss:$16 sps:$4 sm:$0xff]   ;;  %1731 = vmatprep.subr.bf16.mxu1 %v2698_v27 }
 0x90f   :  { %1732 = vmatpush1.bf16.msra.mxu1 %v2696_v29  ;;  %v2738_v27 = vld [vmem:[#allocation10 + $0x20] sm:$0xff]   ;;  %v2740_v29 = vld [vmem:[#allocation10 + $0x68] sm:$0xff]  }
 0x910   :  { %1733 = vmatprep.subr.bf16.mxu1 %v2704_v32  ;;  %v2742_v32 = vld [vmem:[#allocation10 + $0x28] sm:$0xff]  }
 0x916   :  { %v2787_v34 = vpop.eup %2786 }
 0x917   :  { %v650_v37 = vmul.f32 %v2787_v34, %v3232_v1  ;;  %v2789_v13 = vpop.eup %2788  ;;  %v1326_v1 = vpop.permute.xlu1 %1325  ;;  %v2707_v34 = vld [vmem:[#allocation8 + $0xac] ss:$16 sps:$4 sm:$0xff]  }
 0x918   :  { %v2791_v44 = vpop.eup %2790 }
 0x919   :  { %v651_v38 = vpack.c.bf16 %v650_v37, %v649_v36  ;;  %v2702_v36 = vld [vmem:[#allocation8 + $0xa0] ss:$16 sps:$4 sm:$0xff]   ;;  %v2705_v37 = vld [vmem:[#allocation8 + $0xa8] ss:$16 sps:$4 sm:$0xff]  }
 0x91a   :  { %1734 = vmatpush1.bf16.msra.mxu1 %v2702_v36  ;;  %v2744_v36 = vld [vmem:[#allocation10 + $0x70] sm:$0xff]  }
 0x920   :  { %v1323_v61 = vpop.permute.xlu0 %1322 }
 0x921   :  { %v1332_v12 = vsel %vm436_vm5, %v651_v38, %v1323_v61  ;;  %v2710_v38 = vld [vmem:[#allocation8 + $0xc4] ss:$16 sps:$4 sm:$0xff]  }
 0x922   :  { %v1335_v54 = vsel %vm1333_vm9, %v1332_v12, %v1326_v1  ;;  %1735 = vmatprep.subr.bf16.mxu1 %v2710_v38  ;;  %v2746_v38 = vld [vmem:[#allocation10 + $0x30] sm:$0xff]  }
 0x938   :  { %v1262_v39 = vpop.f32.mrb[24].mxu0 }
 0x939   :  { %v2585_v40 = vpop.f32.mrb[25].mxu0  ;;  %v1318_v47 = vmul.f32 %v2789_v13, %v1262_v39  ;;  %v2713_v39 = vld [vmem:[#allocation8 + $0xcc] ss:$16 sps:$4 sm:$0xff]  }
 0x93a   :  { %v1265_v42 = vpop.f32.mrb[26].mxu0  ;;  %v2708_v40 = vld [vmem:[#allocation8 + $0xc0] ss:$16 sps:$4 sm:$0xff]   ;;  %v2719_v13 = vld [vmem:[#allocation8 + $0xec] ss:$16 sps:$4 sm:$0xff]  }
 0x93b   :  { %v2586_v43 = vpop.f32.mrb[27].mxu0  ;;  %v2711_v42 = vld [vmem:[#allocation8 + $0xc8] ss:$16 sps:$4 sm:$0xff]   ;;  %1736 = vmatpush1.bf16.msra.mxu1 %v2708_v40 }
 0x93c   :  { %v2716_v43 = vld [vmem:[#allocation8 + $0xe4] ss:$16 sps:$4 sm:$0xff]   ;;  %v2748_v40 = vld [vmem:[#allocation10 + $0x78] sm:$0xff]  }
 0x93d   :  { %1737 = vmatprep.subr.bf16.mxu1 %v2716_v43  ;;  %v2750_v43 = vld [vmem:[#allocation10 + $0x38] sm:$0xff]  }
 0x94e   :  { %v1310_v45 = vpop.f32.mrb[40].mxu1 }
 0x94f   :  { %v1319_v48 = vmul.f32 %v2791_v44, %v1310_v45  ;;  %v2591_v19 = vpop.f32.mrb[41].mxu1  ;;  %v2714_v44 = vld [vmem:[#allocation8 + $0xe0] ss:$16 sps:$4 sm:$0xff]   ;;  %v2717_v45 = vld [vmem:[#allocation8 + $0xe8] ss:$16 sps:$4 sm:$0xff]  }
 0x950   :  { %v1313_v50 = vpop.f32.mrb[42].mxu1  ;;  %1738 = vmatpush1.bf16.msra.mxu1 %v2714_v44  ;;  %v1545_v44 = vsub.s32 0, %v3171_v17 }
 0x951   :  { %v1320_v51 = vpack.c.bf16 %v1319_v48, %v1318_v47  ;;  %v2592_v52 = vpop.f32.mrb[43].mxu1  ;;  %2433 = vmatprep.subr.bf16.mxu1 %v2720_v8 }
 0x953   :  { %1328 = vrot.lane.b32.xlu1 %v1320_v51, %s2974_s1 }
 0x9c5   :  { %v1329_v33 = vpop.permute.xlu1 %1328 }
 0x9c6   :  { %v1338_v23 = vsel %vm1336_vm10, %v1335_v54, %v1329_v33 }
 0x9c7   :  { %2610 = vmatmul.mubr.bf16.vlgmr.msra.gmra.mrb[28].mxu0 %v1338_v23 }
 0x9c8   :  { %1798 = vmatprep.mubr.bf16.mxu0 %v2972_v30  ;;  %1767 = vmatpush1.bf16.msra.mxu0 %v2675_v11  ;;  %v2723_v11 = vld [vmem:[#allocation10 + $0x80] sm:$0xff]  }
 0x9c9   :  { %1768 = vmatprep.subr.bf16.mxu0 %v2683_v49  ;;  %v2727_v49 = vld [vmem:[#allocation10 + $0x88] sm:$0xff]  }
 0x9cc   :  { %1769 = vmatpush1.bf16.msra.mxu0 %v2681_v18  ;;  %v2729_v18 = vld [vmem:[#allocation10 + $0xd0] sm:$0xff]  }
 0x9cd   :  { %1770 = vmatprep.subr.bf16.mxu0 %v2689_v22  ;;  %v2731_v22 = vld [vmem:[#allocation10 + $0x90] sm:$0xff]  }
 0x9d0   :  { %1771 = vmatpush1.bf16.msra.mxu0 %v2687_v24  ;;  %v2733_v24 = vld [vmem:[#allocation10 + $0xd8] sm:$0xff]  }
 0x9d1   :  { %1772 = vmatprep.subr.bf16.mxu0 %v2695_v53  ;;  %v2735_v53 = vld [vmem:[#allocation10 + $0x98] sm:$0xff]  }
 0x9d4   :  { %1773 = vmatpush1.bf16.msra.mxu0 %v2693_v26  ;;  %v2737_v26 = vld [vmem:[#allocation10 + $0xe0] sm:$0xff]  }
 0x9d5   :  { %1774 = vmatprep.subr.bf16.mxu0 %v2701_v28  ;;  %v2739_v28 = vld [vmem:[#allocation10 + $0xa0] sm:$0xff]  }
 0x9d8   :  { %1775 = vmatpush1.bf16.msra.mxu0 %v2699_v31  ;;  %v2741_v31 = vld [vmem:[#allocation10 + $0xe8] sm:$0xff]  }
 0x9d9   :  { %1776 = vmatprep.subr.bf16.mxu0 %v2707_v34  ;;  %v2743_v34 = vld [vmem:[#allocation10 + $0xa8] sm:$0xff]  }
 0x9dc   :  { %1777 = vmatpush1.bf16.msra.mxu0 %v2705_v37  ;;  %v2745_v37 = vld [vmem:[#allocation10 + $0xf0] sm:$0xff]  }
 0x9dd   :  { %1778 = vmatprep.subr.bf16.mxu0 %v2713_v39  ;;  %v2747_v39 = vld [vmem:[#allocation10 + $0xb0] sm:$0xff]  }
 0x9e0   :  { %1779 = vmatpush1.bf16.msra.mxu0 %v2711_v42  ;;  %v2749_v42 = vld [vmem:[#allocation10 + $0xf8] sm:$0xff]  }
 0x9e1   :  { %1780 = vmatprep.subr.bf16.mxu0 %v2719_v13  ;;  %v2751_v13 = vld [vmem:[#allocation10 + $0xb8] sm:$0xff]  }
 0x9e4   :  { %1781 = vmatpush1.bf16.msra.mxu0 %v2717_v45  ;;  %v1553_v45 = vsub.s32 2, %v3171_v17 }
 0x9e5   :  { %2455 = vmatprep.subr.bf16.mxu0 %v2721_v10 }
 0xa9a   :  { %v1445_v56 = vpop.f32.mrb[28].mxu0 }
 0xa9b   :  { %v1446_v35 = vadd.f32 %v2301_v55, %v1445_v56  ;;  %v2611_v57 = vpop.f32.mrb[29].mxu0 }
 0xa9c   :  { %v1448_v58 = vpop.f32.mrb[30].mxu0 }
 0xa9d   :  { %v3363_v60 = vadd.f32 %v2816_v59, %v1446_v35  ;;  %v1449_v62 = vadd.f32 %v2301_v55, %v1448_v58  ;;  %v2612_v63 = vpop.f32.mrb[31].mxu0  ;;  %v2310_v58 = vld [vmem:[%s3462_s6] ss:$0 sm:$0xff] }
 0xa9f   :  { %v3365_v2 = vadd.f32 %v2817_v0, %v1449_v62  ;;  %1456 = vadd.xlane.f32.xlu1 %v3363_v60 }
 0xaa1   :  { %1458 = vadd.xlane.f32.xlu0 %v3365_v2 }
 0xb2c   :  { %v1457_v30 = vpop.xlane.xlu1 %1456 }
 0xb2d   :  { %v1460_v46 = vmul.f32 0.0078125, %v1457_v30 }
 0xb2e   :  { %v1459_v4 = vpop.xlane.xlu0 %1458 }
 0xb2f   :  { %v3370_v5 = vsub.f32 %v3363_v60, %v1460_v46  ;;  %v1461_v6 = vmul.f32 0.0078125, %v1459_v4  ;;  %v2311_v46 = vld [vmem:[%s3463_s7] ss:$0 sm:$0xff] }
 0xb31   :  { %v3373_v7 = vsub.f32 %v3365_v2, %v1461_v6  ;;  %v1464_v9 = vmul.f32 %v3370_v5, %v3370_v5  ;;  %v1478_v62 = vmul.f32 %v2310_v58, %v3370_v5  ;;  %v2724_v5 = vld [vmem:[#allocation10 + $0x48] sm:$0xff]  }
 0xb33   :  { %1466 = vadd.xlane.f32.xlu0 %v1464_v9  ;;  %v1465_v3 = vmul.f32 %v3373_v7, %v3373_v7  ;;  %v1479_v63 = vmul.f32 %v2310_v58, %v3373_v7  ;;  %v2725_v7 = vld [vmem:[#allocation10 + $0xc8] sm:$0xff]  }
 0xb37   :  { %1468 = vadd.xlane.f32.xlu0 %v1465_v3 }
 0xbc0   :  { %v1467_v47 = vpop.xlane.xlu0 %1466 }
 0xbc1   :  { %v1470_v48 = vmul.f32 0.0078125, %v1467_v47  ;;  %v1541_v47 = vld [vmem:[%s3465_s9] sm:$0xf] }
 0xbc3   :  { %v1480_v19 = vadd.f32 1e-05, %v1470_v48  ;;  %v1549_v48 = vsub.s32 1, %v3171_v17 }
 0xbc4   :  { %v1469_v50 = vpop.xlane.xlu0 %1468 }
 0xbc5   :  { %2792 = vrsqrt.f32 %v1480_v19  ;;  %v1471_v51 = vmul.f32 0.0078125, %v1469_v50  ;;  %vm1484_vm11 = vcmp.eq.f32.partialorder %v1480_v19, inf  ;;  %v1487_v12 = vand.u32 2147483648, %v1480_v19 }
 0xbc6   :  { %vm1486_vm12 = vcmp.eq.f32.partialorder %v1480_v19, 0.0  ;;  %v1546_v50 = vrot.slane %v1541_v47, %v1545_v44 }
 0xbc7   :  { %v1481_v52 = vadd.f32 1e-05, %v1471_v51  ;;  %v1554_v51 = vrot.slane %v1541_v47, %v1553_v45 }
 0xbc9   :  { %2794 = vrsqrt.f32 %v1481_v52  ;;  %vm1491_vm13 = vcmp.eq.f32.partialorder %v1481_v52, inf  ;;  %v1494_v56 = vand.u32 2147483648, %v1481_v52  ;;  %vm1493_vm14 = vcmp.eq.f32.partialorder %v1481_v52, 0.0 }
 0xbcf   :  { %v2793_v61 = vpop.eup %2792 }
 0xbd0   :  { %v1483_v1 = vmul.f32 %v2793_v61, %v1480_v19 }
 0xbd2   :  { %v1485_v54 = vsel %vm1484_vm11, %v1480_v19, %v1483_v1  ;;  %v1557_v19 = vsub.s32 3, %v3171_v17 }
 0xbd3   :  { %v1488_v33 = vsel %vm1486_vm12, %v1487_v12, %v1485_v54  ;;  %v2795_v23 = vpop.eup %2794 }
 0xbd4   :  { %2796 = vrcp.f32 %v1488_v33  ;;  %v1490_v55 = vmul.f32 %v2795_v23, %v1481_v52  ;;  %v1558_v61 = vrot.slane %v1541_v47, %v1557_v19 }
 0xbd6   :  { %v1492_v35 = vsel %vm1491_vm13, %v1481_v52, %v1490_v55  ;;  %v1550_v52 = vrot.slane %v1541_v47, %v1549_v48 }
 0xbd7   :  { %v1495_v57 = vsel %vm1493_vm14, %v1494_v56, %v1492_v35 }
 0xbd8   :  { %2798 = vrcp.f32 %v1495_v57 }
 0xbde   :  { %v2797_v59 = vpop.eup %2796 }
 0xbdf   :  { %v1497_v0 = vmul.f32 %v2797_v59, %v1478_v62 }
 0xbe1   :  { %v1506_v6 = vadd.f32 %v2311_v46, %v1497_v0 }
 0xbe2   :  { %v2799_v30 = vpop.eup %2798 }
 0xbe3   :  { %v1499_v4 = vmul.f32 %v2799_v30, %v1479_v63 }
 0xbe5   :  { %v1507_v9 = vadd.f32 %v2311_v46, %v1499_v4 }
 0xbe7   :  { %v1508_v3 = vpack.c.bf16 %v1507_v9, %v1506_v6 }
 0xbe9   :  { %1756 = vmatmul.mubr.bf16.vlgmr.msra.gmra.mrb[44].mxu1 %v1508_v3  ;;  %1799 = vmatmul.mubr.bf16.vlgmr.msra.gmra.mrb[32].mxu0 %v1508_v3 }
 0xbea   :  { %2434 = vmatpush3.bf16.msra.mxu1 %v2722_v14  ;;  %2456 = vmatpush3.bf16.msra.mxu0 %v2723_v11 }
 0xbeb   :  { %2435 = vmatprep.subr.bf16.mxu1 %v2724_v5  ;;  %2457 = vmatprep.subr.bf16.mxu0 %v2725_v7 }
 0xbee   :  { %2436 = vmatpush3.bf16.msra.mxu1 %v2726_v15  ;;  %2458 = vmatpush3.bf16.msra.mxu0 %v2727_v49 }
 0xbef   :  { %2437 = vmatprep.subr.bf16.mxu1 %v2728_v16  ;;  %2459 = vmatprep.subr.bf16.mxu0 %v2729_v18 }
 0xbf2   :  { %2438 = vmatpush3.bf16.msra.mxu1 %v2730_v20  ;;  %2460 = vmatpush3.bf16.msra.mxu0 %v2731_v22 }
 0xbf3   :  { %2439 = vmatprep.subr.bf16.mxu1 %v2732_v21  ;;  %2461 = vmatprep.subr.bf16.mxu0 %v2733_v24 }
 0xbf6   :  { %2440 = vmatpush3.bf16.msra.mxu1 %v2734_v41  ;;  %2462 = vmatpush3.bf16.msra.mxu0 %v2735_v53 }
 0xbf7   :  { %2441 = vmatprep.subr.bf16.mxu1 %v2736_v25  ;;  %2463 = vmatprep.subr.bf16.mxu0 %v2737_v26 }
 0xbfa   :  { %2442 = vmatpush3.bf16.msra.mxu1 %v2738_v27  ;;  %2464 = vmatpush3.bf16.msra.mxu0 %v2739_v28 }
 0xbfb   :  { %2443 = vmatprep.subr.bf16.mxu1 %v2740_v29  ;;  %2465 = vmatprep.subr.bf16.mxu0 %v2741_v31 }
 0xbfe   :  { %2444 = vmatpush3.bf16.msra.mxu1 %v2742_v32  ;;  %2466 = vmatpush3.bf16.msra.mxu0 %v2743_v34 }
 0xbff   :  { %2445 = vmatprep.subr.bf16.mxu1 %v2744_v36  ;;  %2467 = vmatprep.subr.bf16.mxu0 %v2745_v37 }
 0xc02   :  { %2446 = vmatpush3.bf16.msra.mxu1 %v2746_v38  ;;  %2468 = vmatpush3.bf16.msra.mxu0 %v2747_v39 }
 0xc03   :  { %2447 = vmatprep.subr.bf16.mxu1 %v2748_v40  ;;  %2469 = vmatprep.subr.bf16.mxu0 %v2749_v42 }
 0xc06   :  { %2448 = vmatpush3.bf16.msra.mxu1 %v2750_v43  ;;  %2470 = vmatpush3.bf16.msra.mxu0 %v2751_v13 }
 0xcbc   :  { %v1757_v1 = vpop.f32.mrb[44].mxu1  ;;  %v1800_v12 = vpop.f32.mrb[32].mxu0 }
 0xcbd   :  { %v3394_v54 = vadd.f32 %v1757_v1, %v1546_v50  ;;  %v3396_v33 = vadd.f32 %v1800_v12, %v1554_v51  ;;  %v1759_v23 = vpop.f32.mrb[45].mxu1  ;;  %v1802_v55 = vpop.f32.mrb[33].mxu0 }
 0xcbe   :  { %v3398_v56 = vadd.f32 %v1759_v23, %v1550_v52  ;;  %v3400_v35 = vadd.f32 %v1802_v55, %v1558_v61  ;;  %v1761_v57 = vpop.f32.mrb[46].mxu1  ;;  %v1804_v58 = vpop.f32.mrb[34].mxu0 }
 0xcbf   :  { %v1817_v17 = vmul.f32 0.044715, %v3394_v54  ;;  %v1819_v59 = vmul.f32 0.044715, %v3396_v33  ;;  %v1762_v62 = vadd.f32 %v1761_v57, %v1546_v50  ;;  %v1805_v63 = vadd.f32 %v1804_v58, %v1554_v51  ;;  %v1763_v0 = vpop.f32.mrb[47].mxu1  ;;  %v1806_v30 = vpop.f32.mrb[35].mxu0 }
 0xcc0   :  { %v1818_v46 = vmul.f32 0.044715, %v3398_v56  ;;  %v1820_v4 = vmul.f32 0.044715, %v3400_v35  ;;  %v3406_v6 = vadd.f32 %v1763_v0, %v1550_v52  ;;  %v3408_v9 = vadd.f32 %v1806_v30, %v1558_v61 }
 0xcc1   :  { %v1825_v3 = vmul.f32 %v1817_v17, %v3394_v54  ;;  %v1827_v8 = vmul.f32 %v1819_v59, %v3396_v33  ;;  %v1821_v10 = vmul.f32 0.044715, %v1762_v62  ;;  %v1823_v14 = vmul.f32 0.044715, %v1805_v63 }
 0xcc2   :  { %v1826_v11 = vmul.f32 %v1818_v46, %v3398_v56  ;;  %v1828_v5 = vmul.f32 %v1820_v4, %v3400_v35  ;;  %v1822_v7 = vmul.f32 0.044715, %v3406_v6  ;;  %v1824_v15 = vmul.f32 0.044715, %v3408_v9 }
 0xcc3   :  { %v1833_v49 = vmul.f32 %v1825_v3, %v3394_v54  ;;  %v1835_v16 = vmul.f32 %v1827_v8, %v3396_v33  ;;  %v1829_v18 = vmul.f32 %v1821_v10, %v1762_v62  ;;  %v1831_v20 = vmul.f32 %v1823_v14, %v1805_v63 }
 0xcc4   :  { %v1834_v22 = vmul.f32 %v1826_v11, %v3398_v56  ;;  %v1836_v21 = vmul.f32 %v1828_v5, %v3400_v35  ;;  %v1830_v24 = vmul.f32 %v1822_v7, %v3406_v6  ;;  %v1832_v41 = vmul.f32 %v1824_v15, %v3408_v9 }
 0xcc5   :  { %v1841_v53 = vadd.f32 %v1833_v49, %v3394_v54  ;;  %v1843_v25 = vadd.f32 %v1835_v16, %v3396_v33  ;;  %v1837_v26 = vmul.f32 %v1829_v18, %v1762_v62  ;;  %v1839_v27 = vmul.f32 %v1831_v20, %v1805_v63 }
 0xcc6   :  { %v1838_v28 = vmul.f32 %v1830_v24, %v3406_v6  ;;  %v1840_v29 = vmul.f32 %v1832_v41, %v3408_v9  ;;  %v1842_v37 = vadd.f32 %v1834_v22, %v3398_v56  ;;  %v1844_v42 = vadd.f32 %v1836_v21, %v3400_v35 }
 0xcc7   :  { %v1849_v31 = vmul.f32 0.7978846, %v1841_v53  ;;  %v1851_v32 = vmul.f32 0.7978846, %v1843_v25  ;;  %v1845_v34 = vadd.f32 %v1837_v26, %v1762_v62  ;;  %v1847_v36 = vadd.f32 %v1839_v27, %v1805_v63 }
 0xcc8   :  { %v1846_v38 = vadd.f32 %v1838_v28, %v3406_v6  ;;  %v1850_v43 = vmul.f32 0.7978846, %v1842_v37  ;;  %v1848_v44 = vadd.f32 %v1840_v29, %v3408_v9  ;;  %v1852_v45 = vmul.f32 0.7978846, %v1844_v42 }
 0xcc9   :  { %2800 = vtanh.f32 %v1849_v31  ;;  %v1853_v39 = vmul.f32 0.7978846, %v1845_v34  ;;  %v1855_v40 = vmul.f32 0.7978846, %v1847_v36  ;;  %v1809_v1 = vmul.f32 0.5, %v3394_v54 }
 0xcca   :  { %2802 = vtanh.f32 %v1851_v32  ;;  %v1854_v13 = vmul.f32 0.7978846, %v1846_v38  ;;  %v1856_v47 = vmul.f32 0.7978846, %v1848_v44  ;;  %v1813_v12 = vmul.f32 0.5, %v1762_v62 }
 0xccb   :  { %2804 = vtanh.f32 %v1853_v39  ;;  %v1811_v57 = vmul.f32 0.5, %v3396_v33  ;;  %v1815_v58 = vmul.f32 0.5, %v1805_v63  ;;  %v1810_v0 = vmul.f32 0.5, %v3398_v56 }
 0xccc   :  { %2806 = vtanh.f32 %v1855_v40  ;;  %v1814_v8 = vmul.f32 0.5, %v3406_v6  ;;  %v1812_v62 = vmul.f32 0.5, %v3400_v35  ;;  %v1816_v5 = vmul.f32 0.5, %v3408_v9  ;;  %v2344_v35 = vld [vmem:[%s3467_s11] ss:$0 sm:$0xff]  ;;  %s2928_s11 = scalar_lea.vmem %s2240_s23, 256 }
 0xccd   :  { %2808 = vtanh.f32 %v1850_v43  ;;  %p2929_p12 = scmp.ne.s32.totalorder %s2240_s23, %s2928_s11  ;;  %p2934_p0 = scmp.lt.s32.totalorder %s2928_s11, %s2928_s11 }
 0xcce   :  { %2810 = vtanh.f32 %v1854_v13 }
 0xccf   :  { %2812 = vtanh.f32 %v1852_v45  ;;  %p2935_p1 = por %p2934_p0, %p2933_p13 }
 0xcd0   :  { %2814 = vtanh.f32 %v1856_v47 }
 0xcd1   :  { %p2936_p2 = pnand %p2935_p1, %p2929_p12 }
 0xcd3   :  { %v2801_v48 = vpop.eup %2800 }
 0xcd4   :  { %v2803_v19 = vpop.eup %2802  ;;  %v1865_v50 = vadd.f32 1.0, %v2801_v48 }
 0xcd5   :  { %v2805_v51 = vpop.eup %2804  ;;  %v1867_v52 = vadd.f32 1.0, %v2803_v19 }
 0xcd6   :  { %v2807_v61 = vpop.eup %2806  ;;  %v1869_v23 = vadd.f32 1.0, %v2805_v51  ;;  %v1873_v46 = vmul.f32 %v1865_v50, %v1809_v1 }
 0xcd7   :  { %v2809_v55 = vpop.eup %2808  ;;  %v1871_v17 = vadd.f32 1.0, %v2807_v61  ;;  %v1875_v14 = vmul.f32 %v1867_v52, %v1811_v57 }
 0xcd8   :  { %v2811_v59 = vpop.eup %2810  ;;  %v1866_v30 = vadd.f32 1.0, %v2809_v55  ;;  %v1877_v4 = vmul.f32 %v1869_v23, %v1813_v12 }
 0xcd9   :  { %v2813_v3 = vpop.eup %2812  ;;  %v1870_v10 = vadd.f32 1.0, %v2811_v59  ;;  %v1879_v11 = vmul.f32 %v1871_v17, %v1815_v58 }
 0xcda   :  { %v2815_v54 = vpop.eup %2814  ;;  %v1868_v33 = vadd.f32 1.0, %v2813_v3  ;;  %v1881_v63 = vpack.c.bf16 %v1877_v4, %v1873_v46  ;;  %v1874_v7 = vmul.f32 %v1866_v30, %v1810_v0 }
 0xcdb   :  { %v1878_v15 = vmul.f32 %v1870_v10, %v1814_v8  ;;  %v1872_v49 = vadd.f32 1.0, %v2815_v54  ;;  %v1883_v56 = vpack.c.bf16 %v1879_v11, %v1875_v14 }
 0xcdc   :  { %v1876_v18 = vmul.f32 %v1868_v33, %v1812_v62 }
 0xcdd   :  { %v1882_v16 = vpack.c.bf16 %v1878_v15, %v1874_v7  ;;  %v1880_v20 = vmul.f32 %v1872_v49, %v1816_v5 }
 0xcdf   :  { %2180 = vmatprep.mubr.bf16.mxu1 %v1882_v16  ;;  %v1884_v22 = vpack.c.bf16 %v1880_v20, %v1876_v18 }
 0xce0   :  { %2181 = vmatmul.mubr.bf16.vlgmr.msra.gmra.mrb[48].mxu1 %v1881_v63 }
 0xce1   :  { %2221 = vmatprep.mubr.bf16.mxu0 %v1884_v22 }
 0xce2   :  { %2222 = vmatmul.mubr.bf16.vlgmr.msra.gmra.mrb[36].mxu0 %v1883_v56 }
 0xdb3   :  { %v2449_v6 = vpop.f32.mrb[48].mxu1 }
 0xdb4   :  { %v2450_v9 = vpop.f32.mrb[49].mxu1 }
 0xdb5   :  { %v2471_v21 = vpop.f32.mrb[36].mxu0  ;;  %v2451_v24 = vadd.f32 %v2450_v9, %v2449_v6  ;;  %v2452_v41 = vpop.f32.mrb[50].mxu1 }
 0xdb6   :  { %v2472_v53 = vpop.f32.mrb[37].mxu0  ;;  %v2453_v25 = vpop.f32.mrb[51].mxu1 }
 0xdb7   :  { %v2183_v26 = vadd.f32 %v2451_v24, %v2344_v35  ;;  %v2473_v27 = vadd.f32 %v2472_v53, %v2471_v21  ;;  %v2474_v28 = vpop.f32.mrb[38].mxu0  ;;  %v2454_v29 = vadd.f32 %v2453_v25, %v2452_v41 }
 0xdb8   :  { %v2475_v31 = vpop.f32.mrb[39].mxu0 }
 0xdb9   :  { %v2224_v32 = vadd.f32 %v2473_v27, %v2183_v26  ;;  %v2186_v34 = vadd.f32 %v2454_v29, %v2344_v35  ;;  %v2476_v36 = vadd.f32 %v2475_v31, %v2474_v28 }
 0xdbb   :  { %v2230_v37 = vadd.f32 %v2224_v32, %v3363_v60  ;;  %v2227_v38 = vadd.f32 %v2476_v36, %v2186_v34 }
 0xdbd   :  { %2232 = vst [vmem:[#allocation11] sm:$0xff] %v2230_v37  ;;  %v2231_v39 = vadd.f32 %v2227_v38, %v3365_v2 }
 0xdbf   :  { %2233 = vst [vmem:[#allocation11 + $0x8] sm:$0xff] %v2231_v39 }
 0xdc0   :  { %2939 = shalt.err (!%p2936_p2)
}
 0xdc1   :  { %s2940_s26 = scalar_lea.hbm %s3468_s12, 256 }
 0xdc2   :  { %p2941_p3 = scmp.ne.s32.totalorder %s3468_s12, %s2940_s26  ;;  %p2944_p4 = scmp.lt.u32.totalorder %s2940_s26, %s3468_s12 }
 0xdc4   :  { %p2946_p5 = pnand %p2944_p4, %p2941_p3 }
 0xdc6   :  { %2949 = shalt.err (!%p2946_p5)
}
 0xdc7   :  { %2245 = dma.vmem_to_hbm [thread:$0]  %s2240_s23, 256, %s3468_s12, [#allocation4], %s2965_s8, %s2965_s8, %s2966_s18  }
 0xdc8   :  { %2956 = dma.done.wait [#allocation4], 256  }
 0xdc9   :  { %2957 = vsyncadd [#allocation4], 4294967040 }
 0xdca   :  { %2249 = vsyncpa [#allocation3], 1 }
 0xdcb   :  { %2250 = vsyncpa [#allocation6], 1 }
 0xdcc   :  { %2251 = vsyncpa [#allocation9], 1 }
 0xdcd   :  { %2252 = vsyncpa [#allocation4], 1 }

</bundles_post_ra>
